<compile_context>
chip_gen: v7x
topology: tpu7x:2x2x1
jax: 0.10.0
libtpu: 0.0.40
codegen_flags: <defaults>
</compile_context>

<pallas_src>
import functools

import jax
import jax.numpy as jnp
from jax import lax
from jax.experimental import pallas as pl
from jax.experimental.pallas import tpu as pltpu


# ----------------------------- Pallas kernel -------------------------------


def _layer_norm(v, w, b, eps=1e-5):
    m = jnp.mean(v, axis=-1, keepdims=True)
    c = v - m
    var = jnp.mean(c * c, axis=-1, keepdims=True)
    return c * lax.rsqrt(var + eps) * w + b


# Row layout of the packed per-layer vector tensor (shape (8, 3D), zero padded).
_ROW_BQKV, _ROW_B1, _ROW_BO, _ROW_B2 = 0, 1, 2, 3
_ROW_LN1W, _ROW_LN1B, _ROW_LN2W, _ROW_LN2B = 4, 5, 6, 7


def fused_transformer_kernel(
    x_ref,      # (T, D)   embedded tokens, seq-major rows (t = s*B + b); const block
    wqkv_ref,   # (D, 3D)  this layer's pre-transposed in_proj weight
    wo_ref,     # (D, D)   pre-transposed out_proj weight
    w1_ref,     # (D, 2D)  pre-transposed linear1 weight
    w2_ref,     # (2D, D)  pre-transposed linear2 weight
    vec_ref,    # (8, 3D)  packed biases + LayerNorm params (see _ROW_* layout)
    fcw_ref,    # (D, O_pad)  final fc weight, lane-padded; const block
    fcb_ref,    # (1, O_pad)  final fc bias, lane-padded; const block
    out_ref,    # (T, O_pad)  final output (written on last layer only)
    act_ref,    # VMEM scratch (T, D) f32 — activation resident across layers
    attn_ref,   # VMEM scratch (S, B, D) f32 — per-head attention staging
    *,
    num_heads: int,
    seq_len: int,
    batch: int,
):
    layer = pl.program_id(0)
    num_layers = pl.num_programs(0)

    # Seed the resident activation from the embedded tokens on layer 0.
    @pl.when(layer == 0)
    def _():
        act_ref[...] = x_ref[...]

    x = act_ref[...]                                  # (T, D) f32
    T, D = x.shape
    S, B, H = seq_len, batch, num_heads
    hd = D // H
    scale = 1.0 / float(hd) ** 0.5

    # Unpack the per-layer vector bundle (single DMA'd block).
    vecs = vec_ref[...]                               # (8, 3D)
    bqkv = vecs[_ROW_BQKV:_ROW_BQKV + 1, :]           # (1, 3D)
    b1 = vecs[_ROW_B1:_ROW_B1 + 1, :2 * D]            # (1, 2D)
    bo = vecs[_ROW_BO:_ROW_BO + 1, :D]                # (1, D)
    b2 = vecs[_ROW_B2:_ROW_B2 + 1, :D]
    ln1w = vecs[_ROW_LN1W:_ROW_LN1W + 1, :D]
    ln1b = vecs[_ROW_LN1B:_ROW_LN1B + 1, :D]
    ln2w = vecs[_ROW_LN2W:_ROW_LN2W + 1, :D]
    ln2b = vecs[_ROW_LN2B:_ROW_LN2B + 1, :D]

    # ---- multi-head self-attention: S independent (B x B) problems ----
    qkv = jnp.dot(x, wqkv_ref[...], preferred_element_type=jnp.float32) + bqkv  # (T, 3D)
    qkv3 = qkv.reshape(S, B, 3 * D)                   # seq-major -> (S, B, 3D)

    # Heads: small compile-time unrolled loop with rank-3 batched dots; each head
    # writes a static lane slice of the VMEM staging buffer (no concatenate).
    for h in range(H):
        qh = qkv3[:, :, h * hd:(h + 1) * hd] * scale              # (S, B, hd)
        kh = qkv3[:, :, D + h * hd:D + (h + 1) * hd]              # (S, B, hd)
        vh = qkv3[:, :, 2 * D + h * hd:2 * D + (h + 1) * hd]      # (S, B, hd)
        s_sc = jnp.einsum('sbd,scd->sbc', qh, kh,
                          preferred_element_type=jnp.float32)     # (S, B, B)
        s_sc = s_sc - jnp.max(s_sc, axis=-1, keepdims=True)
        p = jnp.exp(s_sc)
        p = p / jnp.sum(p, axis=-1, keepdims=True)                # exact softmax
        attn_ref[:, :, h * hd:(h + 1) * hd] = jnp.einsum(
            'sbc,scd->sbd', p, vh, preferred_element_type=jnp.float32)

    attn = attn_ref[...].reshape(T, D)
    attn = jnp.dot(attn, wo_ref[...], preferred_element_type=jnp.float32) + bo

    # residual + post-LayerNorm (f32)
    x = _layer_norm(x + attn, ln1w, ln1b)

    # ---- feed-forward (ReLU) ----
    hmid = jnp.maximum(
        jnp.dot(x, w1_ref[...], preferred_element_type=jnp.float32) + b1, 0.0)
    ff = jnp.dot(hmid, w2_ref[...], preferred_element_type=jnp.float32) + b2
    x = _layer_norm(x + ff, ln2w, ln2b)

    act_ref[...] = x

    # ---- fused final nn.Linear, only on the last layer ----
    @pl.when(layer == num_layers - 1)
    def _():
        out_ref[...] = (
            jnp.dot(x, fcw_ref[...], preferred_element_type=jnp.float32)
            + fcb_ref[...]
        ).astype(out_ref.dtype)


# ------------------------------ JAX wrapper --------------------------------


def run_fused_stack(x, params, *, num_heads, seq_len, batch):
    """x: (T, D) seq-major token slab.  One pallas_call over all layers + fc_out."""
    T, D = x.shape
    st = params["stacked"]
    L = st["wqkv"].shape[0]
    o_pad = params["fc_w_t_pad"].shape[1]

    kernel = functools.partial(
        fused_transformer_kernel, num_heads=num_heads, seq_len=seq_len, batch=batch)

    def per_layer(shape):
        # Per-layer block of an (L, *shape) stacked weight; layer axis squeezed.
        return pl.BlockSpec((None,) + shape, lambda l: (l,) + (0,) * len(shape))

    def const(shape):
        # Constant block index -> fetched once, resident across the layer grid.
        return pl.BlockSpec(shape, lambda l: (0,) * len(shape))

    return pl.pallas_call(
        kernel,
        grid=(L,),
        in_specs=[
            const((T, D)),              # x (embedded tokens)
            per_layer((D, 3 * D)),      # wqkv
            per_layer((D, D)),          # wo
            per_layer((D, 2 * D)),      # w1
            per_layer((2 * D, D)),      # w2
            per_layer((8, 3 * D)),      # packed biases / LN params
            const((D, o_pad)),          # fc weight (lane-padded)
            const((1, o_pad)),          # fc bias
        ],
        out_specs=pl.BlockSpec((T, o_pad), lambda l: (0, 0)),
        out_shape=jax.ShapeDtypeStruct((T, o_pad), jnp.float32),
        scratch_shapes=[
            pltpu.VMEM((T, D), jnp.float32),                 # resident activation
            pltpu.VMEM((seq_len, batch, D), jnp.float32),    # attention head staging
        ],
        compiler_params=pltpu.CompilerParams(
            dimension_semantics=("arbitrary",),
        ),
    )(
        x,
        st["wqkv"], st["wo"], st["w1"], st["w2"], st["vecs"],
        params["fc_w_t_pad"], params["fc_b_pad"],
    )


@functools.partial(jax.jit, static_argnames=("num_heads", "output_dim"))
def simple_transformer_forward(tokens, params, *, num_heads, output_dim):
    """tokens: int32 (batch, seq).  Returns (batch, seq, output_dim)."""
    B, S = tokens.shape
    D = params["embedding"].shape[1]

    # glue: embedding gather + positional embedding (plain JAX, fused under jit)
    x = params["embedding"][tokens] + params["pos_embedding"][:, :S, :]   # (B, S, D)
    # seq-major layout (t = s*B + b): attention becomes S independent BxB blocks.
    x = jnp.transpose(x, (1, 0, 2)).reshape(S * B, D).astype(jnp.float32)

    out = run_fused_stack(x, params, num_heads=num_heads, seq_len=S, batch=B)
    out = out[:, :output_dim]                                             # (S*B, O)
    return out.reshape(S, B, output_dim).transpose(1, 0, 2)               # (B, S, O)


# --------------------------- parameter construction -------------------------


def init_params(key, *, input_dim, model_dim, num_layers, output_dim, max_seq_len):
    D = model_dim
    ks = iter(jax.random.split(key, 4 + 8 * num_layers))
    params = {
        "embedding": 0.02 * jax.random.normal(next(ks), (input_dim, D), jnp.float32),
        "pos_embedding": 0.02
        * jax.random.normal(next(ks), (1, max_seq_len, D), jnp.float32),
    }

    wqkv_l, wo_l, w1_l, w2_l, vec_l = [], [], [], [], []
    for _ in range(num_layers):
        wqkv = 0.02 * jax.random.normal(next(ks), (3 * D, D), jnp.float32)
        bqkv = 0.02 * jax.random.normal(next(ks), (3 * D,), jnp.float32)
        wo = 0.02 * jax.random.normal(next(ks), (D, D), jnp.float32)
        bo = 0.02 * jax.random.normal(next(ks), (D,), jnp.float32)
        w1 = 0.02 * jax.random.normal(next(ks), (2 * D, D), jnp.float32)
        b1 = 0.02 * jax.random.normal(next(ks), (2 * D,), jnp.float32)
        w2 = 0.02 * jax.random.normal(next(ks), (D, 2 * D), jnp.float32)
        b2 = 0.02 * jax.random.normal(next(ks), (D,), jnp.float32)

        wqkv_l.append(wqkv.T)       # (D, 3D)
        wo_l.append(wo.T)           # (D, D)
        w1_l.append(w1.T)           # (D, 2D)
        w2_l.append(w2.T)           # (2D, D)

        # Pack all small per-layer vectors into one (8, 3D) block (single DMA).
        vec = jnp.zeros((8, 3 * D), jnp.float32)
        vec = vec.at[_ROW_BQKV, :].set(bqkv)
        vec = vec.at[_ROW_B1, :2 * D].set(b1)
        vec = vec.at[_ROW_BO, :D].set(bo)
        vec = vec.at[_ROW_B2, :D].set(b2)
        vec = vec.at[_ROW_LN1W, :D].set(1.0)   # ln1 weight
        # ln1 bias row stays zero
        vec = vec.at[_ROW_LN2W, :D].set(1.0)   # ln2 weight
        # ln2 bias row stays zero
        vec_l.append(vec)

    params["stacked"] = {
        "wqkv": jnp.stack(wqkv_l),
        "wo": jnp.stack(wo_l),
        "w1": jnp.stack(w1_l),
        "w2": jnp.stack(w2_l),
        "vecs": jnp.stack(vec_l),
    }

    fc_w = 0.02 * jax.random.normal(next(ks), (output_dim, D), jnp.float32)
    fc_b = 0.02 * jax.random.normal(next(ks), (output_dim,), jnp.float32)
    o_pad = max(128, ((output_dim + 127) // 128) * 128)      # lane-dense output
    params["fc_w_t_pad"] = (
        jnp.zeros((D, o_pad), jnp.float32).at[:, :output_dim].set(fc_w.T))
    params["fc_b_pad"] = (
        jnp.zeros((1, o_pad), jnp.float32).at[:, :output_dim].set(fc_b[None, :]))
    return params


# ----------------------------------- main ------------------------------------

if __name__ == "__main__":
    input_dim = 16    # vocab size
    model_dim = 32
    num_heads = 4
    num_layers = 2
    output_dim = 10
    max_seq_len = 16
    batch = 2
    seq = 8

    key = jax.random.PRNGKey(0)
    k_tok, k_par = jax.random.split(key)
    tokens = jax.random.randint(k_tok, (batch, seq), 0, input_dim, dtype=jnp.int32)
    params = init_params(
        k_par,
        input_dim=input_dim,
        model_dim=model_dim,
        num_layers=num_layers,
        output_dim=output_dim,
        max_seq_len=max_seq_len,
    )

    out = simple_transformer_forward(
        tokens, params, num_heads=num_heads, output_dim=output_dim)
    out = jax.block_until_ready(out)
    assert out.shape == (batch, seq, output_dim)
    print("KERNEL_OK")
</pallas_src>

<mosaic_0001>
module attributes {stable_mosaic.version = 11 : i64} {
  func.func @fused_transformer_kernel(%arg0: i32, %arg1: memref<16x32xf32, #tpu.memory_space<vmem>>, %arg2: memref<1x32x96xf32, #tpu.memory_space<vmem>>, %arg3: memref<1x32x32xf32, #tpu.memory_space<vmem>>, %arg4: memref<1x32x64xf32, #tpu.memory_space<vmem>>, %arg5: memref<1x64x32xf32, #tpu.memory_space<vmem>>, %arg6: memref<1x8x96xf32, #tpu.memory_space<vmem>>, %arg7: memref<32x128xf32, #tpu.memory_space<vmem>>, %arg8: memref<1x128xf32, #tpu.memory_space<vmem>>, %arg9: memref<16x128xf32, #tpu.memory_space<vmem>>, %arg10: memref<16x32xf32, #tpu.memory_space<vmem>>, %arg11: memref<8x2x32xf32, #tpu.memory_space<vmem>>) attributes {dimension_semantics = [#tpu.dimension_semantics<arbitrary>], iteration_bounds = array<i64: 2>, scalar_prefetch = 0 : i64, scratch_operands = 2 : i64, tpu.core_type = #tpu.core_type<tc>, window_params = [{pipeline_mode = #tpu.pipeline_mode<synchronous>, transform_indices = @transform_0, window_bounds = array<i64: 16, 32>}, {transform_indices = @transform_1, window_bounds = array<i64: 1, 32, 96>}, {transform_indices = @transform_2, window_bounds = array<i64: 1, 32, 32>}, {transform_indices = @transform_3, window_bounds = array<i64: 1, 32, 64>}, {transform_indices = @transform_4, window_bounds = array<i64: 1, 64, 32>}, {transform_indices = @transform_5, window_bounds = array<i64: 1, 8, 96>}, {pipeline_mode = #tpu.pipeline_mode<synchronous>, transform_indices = @transform_6, window_bounds = array<i64: 32, 128>}, {pipeline_mode = #tpu.pipeline_mode<synchronous>, transform_indices = @transform_7, window_bounds = array<i64: 1, 128>}, {pipeline_mode = #tpu.pipeline_mode<synchronous>, transform_indices = @transform_8, window_bounds = array<i64: 16, 128>}]} {
    %c0_i32 = arith.constant 0 : i32
    %0 = arith.cmpi eq, %arg0, %c0_i32 : i32
    %1 = arith.extui %0 : i1 to i32
    %c0_i32_0 = arith.constant 0 : i32
    %2 = arith.cmpi ne, %1, %c0_i32_0 : i32
    scf.if %2 {
      %c0_66 = arith.constant 0 : index
      %c0_67 = arith.constant 0 : index
      %153 = vector.load %arg1[%c0_66, %c0_67] : memref<16x32xf32, #tpu.memory_space<vmem>>, vector<16x32xf32>
      %c0_68 = arith.constant 0 : index
      %c0_69 = arith.constant 0 : index
      %154 = vector.load %arg10[%c0_68, %c0_69] : memref<16x32xf32, #tpu.memory_space<vmem>>, vector<16x32xf32>
      tpu.vector_store %arg10[%c0_68, %c0_69], %153 {strides = array<i32>} : memref<16x32xf32, #tpu.memory_space<vmem>>, vector<16x32xf32>,
    } else {
    }
    %c0 = arith.constant 0 : index
    %c0_1 = arith.constant 0 : index
    %3 = vector.load %arg10[%c0, %c0_1] : memref<16x32xf32, #tpu.memory_space<vmem>>, vector<16x32xf32>
    %c0_2 = arith.constant 0 : index
    %c0_3 = arith.constant 0 : index
    %c0_4 = arith.constant 0 : index
    %4 = vector.load %arg6[%c0_2, %c0_3, %c0_4] : memref<1x8x96xf32, #tpu.memory_space<vmem>>, vector<1x8x96xf32>
    %5 = vector.shape_cast %4 : vector<1x8x96xf32> to vector<8x96xf32>
    %6 = vector.extract_strided_slice %5 {offsets = [0, 0], sizes = [1, 96], strides = [1, 1]} : vector<8x96xf32> to vector<1x96xf32>
    %7 = vector.extract_strided_slice %5 {offsets = [1, 0], sizes = [1, 64], strides = [1, 1]} : vector<8x96xf32> to vector<1x64xf32>
    %8 = vector.extract_strided_slice %5 {offsets = [2, 0], sizes = [1, 32], strides = [1, 1]} : vector<8x96xf32> to vector<1x32xf32>
    %9 = vector.extract_strided_slice %5 {offsets = [3, 0], sizes = [1, 32], strides = [1, 1]} : vector<8x96xf32> to vector<1x32xf32>
    %10 = vector.extract_strided_slice %5 {offsets = [4, 0], sizes = [1, 32], strides = [1, 1]} : vector<8x96xf32> to vector<1x32xf32>
    %11 = vector.extract_strided_slice %5 {offsets = [5, 0], sizes = [1, 32], strides = [1, 1]} : vector<8x96xf32> to vector<1x32xf32>
    %12 = vector.extract_strided_slice %5 {offsets = [6, 0], sizes = [1, 32], strides = [1, 1]} : vector<8x96xf32> to vector<1x32xf32>
    %13 = vector.extract_strided_slice %5 {offsets = [7, 0], sizes = [1, 32], strides = [1, 1]} : vector<8x96xf32> to vector<1x32xf32>
    %c0_5 = arith.constant 0 : index
    %c0_6 = arith.constant 0 : index
    %c0_7 = arith.constant 0 : index
    %14 = vector.load %arg2[%c0_5, %c0_6, %c0_7] : memref<1x32x96xf32, #tpu.memory_space<vmem>>, vector<1x32x96xf32>
    %15 = vector.shape_cast %14 : vector<1x32x96xf32> to vector<32x96xf32>
    %cst = arith.constant dense<0.000000e+00> : vector<16x96xf32>
    %16 = tpu.matmul %3, %15, %cst {dimension_numbers = #tpu.dot_dimension_numbers<[1], [0], [0], [1], [0, 0, 1, 1], [], []>} : vector<16x32xf32>, vector<32x96xf32>, vector<16x96xf32> -> vector<16x96xf32>
    %17 = vector.broadcast %6 : vector<1x96xf32> to vector<16x96xf32>
    %18 = arith.addf %16, %17 : vector<16x96xf32>
    %19 = vector.shape_cast %18 : vector<16x96xf32> to vector<8x2x96xf32>
    %20 = vector.extract_strided_slice %19 {offsets = [0, 0, 0], sizes = [8, 2, 8], strides = [1, 1, 1]} : vector<8x2x96xf32> to vector<8x2x8xf32>
    %cst_8 = arith.constant 0.353553385 : f32
    %21 = vector.broadcast %cst_8 : f32 to vector<8x2x8xf32>
    %22 = arith.mulf %20, %21 : vector<8x2x8xf32>
    %23 = vector.extract_strided_slice %19 {offsets = [0, 0, 32], sizes = [8, 2, 8], strides = [1, 1, 1]} : vector<8x2x96xf32> to vector<8x2x8xf32>
    %24 = vector.extract_strided_slice %19 {offsets = [0, 0, 64], sizes = [8, 2, 8], strides = [1, 1, 1]} : vector<8x2x96xf32> to vector<8x2x8xf32>
    "tpu.trace_start"() <{level = 10 : i32, message = "sbd,scd->sbc"}> : () -> ()
    %cst_9 = arith.constant dense<0.000000e+00> : vector<8x2x2xf32>
    %25 = tpu.matmul %22, %23, %cst_9 {dimension_numbers = #tpu.dot_dimension_numbers<[2], [2], [1], [1], [0, 0, 0, 1, 1, 1], [0], [0]>} : vector<8x2x8xf32>, vector<8x2x8xf32>, vector<8x2x2xf32> -> vector<8x2x2xf32>
    "tpu.trace_stop"() : () -> ()
    %cst_10 = arith.constant dense<0xFF800000> : vector<8x2xf32>
    %26 = vector.multi_reduction <maximumf>, %25, %cst_10 [2] : vector<8x2x2xf32> to vector<8x2xf32>
    %27 = vector.shape_cast %26 : vector<8x2xf32> to vector<8x2x1xf32>
    %28 = vector.broadcast %27 : vector<8x2x1xf32> to vector<8x2x2xf32>
    %29 = arith.subf %25, %28 : vector<8x2x2xf32>
    %30 = math.exp %29 : vector<8x2x2xf32>
    %cst_11 = arith.constant dense<0.000000e+00> : vector<8x2xf32>
    %31 = vector.multi_reduction <add>, %30, %cst_11 [2] : vector<8x2x2xf32> to vector<8x2xf32>
    %32 = vector.shape_cast %31 : vector<8x2xf32> to vector<8x2x1xf32>
    %33 = vector.broadcast %32 : vector<8x2x1xf32> to vector<8x2x2xf32>
    %34 = arith.divf %30, %33 : vector<8x2x2xf32>
    "tpu.trace_start"() <{level = 10 : i32, message = "sbc,scd->sbd"}> : () -> ()
    %cst_12 = arith.constant dense<0.000000e+00> : vector<8x2x8xf32>
    %35 = tpu.matmul %34, %24, %cst_12 {dimension_numbers = #tpu.dot_dimension_numbers<[2], [1], [1], [2], [0, 0, 0, 1, 1, 2], [0], [0]>} : vector<8x2x2xf32>, vector<8x2x8xf32>, vector<8x2x8xf32> -> vector<8x2x8xf32>
    "tpu.trace_stop"() : () -> ()
    %c0_13 = arith.constant 0 : index
    %c0_14 = arith.constant 0 : index
    %c0_15 = arith.constant 0 : index
    %36 = vector.load %arg11[%c0_13, %c0_14, %c0_15] : memref<8x2x32xf32, #tpu.memory_space<vmem>>, vector<8x2x8xf32>
    tpu.vector_store %arg11[%c0_13, %c0_14, %c0_15], %35 {strides = array<i32>} : memref<8x2x32xf32, #tpu.memory_space<vmem>>, vector<8x2x8xf32>,
    %37 = vector.extract_strided_slice %19 {offsets = [0, 0, 8], sizes = [8, 2, 8], strides = [1, 1, 1]} : vector<8x2x96xf32> to vector<8x2x8xf32>
    %cst_16 = arith.constant 0.353553385 : f32
    %38 = vector.broadcast %cst_16 : f32 to vector<8x2x8xf32>
    %39 = arith.mulf %37, %38 : vector<8x2x8xf32>
    %40 = vector.extract_strided_slice %19 {offsets = [0, 0, 40], sizes = [8, 2, 8], strides = [1, 1, 1]} : vector<8x2x96xf32> to vector<8x2x8xf32>
    %41 = vector.extract_strided_slice %19 {offsets = [0, 0, 72], sizes = [8, 2, 8], strides = [1, 1, 1]} : vector<8x2x96xf32> to vector<8x2x8xf32>
    "tpu.trace_start"() <{level = 10 : i32, message = "sbd,scd->sbc"}> : () -> ()
    %cst_17 = arith.constant dense<0.000000e+00> : vector<8x2x2xf32>
    %42 = tpu.matmul %39, %40, %cst_17 {dimension_numbers = #tpu.dot_dimension_numbers<[2], [2], [1], [1], [0, 0, 0, 1, 1, 1], [0], [0]>} : vector<8x2x8xf32>, vector<8x2x8xf32>, vector<8x2x2xf32> -> vector<8x2x2xf32>
    "tpu.trace_stop"() : () -> ()
    %cst_18 = arith.constant dense<0xFF800000> : vector<8x2xf32>
    %43 = vector.multi_reduction <maximumf>, %42, %cst_18 [2] : vector<8x2x2xf32> to vector<8x2xf32>
    %44 = vector.shape_cast %43 : vector<8x2xf32> to vector<8x2x1xf32>
    %45 = vector.broadcast %44 : vector<8x2x1xf32> to vector<8x2x2xf32>
    %46 = arith.subf %42, %45 : vector<8x2x2xf32>
    %47 = math.exp %46 : vector<8x2x2xf32>
    %cst_19 = arith.constant dense<0.000000e+00> : vector<8x2xf32>
    %48 = vector.multi_reduction <add>, %47, %cst_19 [2] : vector<8x2x2xf32> to vector<8x2xf32>
    %49 = vector.shape_cast %48 : vector<8x2xf32> to vector<8x2x1xf32>
    %50 = vector.broadcast %49 : vector<8x2x1xf32> to vector<8x2x2xf32>
    %51 = arith.divf %47, %50 : vector<8x2x2xf32>
    "tpu.trace_start"() <{level = 10 : i32, message = "sbc,scd->sbd"}> : () -> ()
    %cst_20 = arith.constant dense<0.000000e+00> : vector<8x2x8xf32>
    %52 = tpu.matmul %51, %41, %cst_20 {dimension_numbers = #tpu.dot_dimension_numbers<[2], [1], [1], [2], [0, 0, 0, 1, 1, 2], [0], [0]>} : vector<8x2x2xf32>, vector<8x2x8xf32>, vector<8x2x8xf32> -> vector<8x2x8xf32>
    "tpu.trace_stop"() : () -> ()
    %c0_21 = arith.constant 0 : index
    %c0_22 = arith.constant 0 : index
    %c8 = arith.constant 8 : index
    %53 = vector.load %arg11[%c0_21, %c0_22, %c8] : memref<8x2x32xf32, #tpu.memory_space<vmem>>, vector<8x2x8xf32>
    tpu.vector_store %arg11[%c0_21, %c0_22, %c8], %52 {strides = array<i32>} : memref<8x2x32xf32, #tpu.memory_space<vmem>>, vector<8x2x8xf32>,
    %54 = vector.extract_strided_slice %19 {offsets = [0, 0, 16], sizes = [8, 2, 8], strides = [1, 1, 1]} : vector<8x2x96xf32> to vector<8x2x8xf32>
    %cst_23 = arith.constant 0.353553385 : f32
    %55 = vector.broadcast %cst_23 : f32 to vector<8x2x8xf32>
    %56 = arith.mulf %54, %55 : vector<8x2x8xf32>
    %57 = vector.extract_strided_slice %19 {offsets = [0, 0, 48], sizes = [8, 2, 8], strides = [1, 1, 1]} : vector<8x2x96xf32> to vector<8x2x8xf32>
    %58 = vector.extract_strided_slice %19 {offsets = [0, 0, 80], sizes = [8, 2, 8], strides = [1, 1, 1]} : vector<8x2x96xf32> to vector<8x2x8xf32>
    "tpu.trace_start"() <{level = 10 : i32, message = "sbd,scd->sbc"}> : () -> ()
    %cst_24 = arith.constant dense<0.000000e+00> : vector<8x2x2xf32>
    %59 = tpu.matmul %56, %57, %cst_24 {dimension_numbers = #tpu.dot_dimension_numbers<[2], [2], [1], [1], [0, 0, 0, 1, 1, 1], [0], [0]>} : vector<8x2x8xf32>, vector<8x2x8xf32>, vector<8x2x2xf32> -> vector<8x2x2xf32>
    "tpu.trace_stop"() : () -> ()
    %cst_25 = arith.constant dense<0xFF800000> : vector<8x2xf32>
    %60 = vector.multi_reduction <maximumf>, %59, %cst_25 [2] : vector<8x2x2xf32> to vector<8x2xf32>
    %61 = vector.shape_cast %60 : vector<8x2xf32> to vector<8x2x1xf32>
    %62 = vector.broadcast %61 : vector<8x2x1xf32> to vector<8x2x2xf32>
    %63 = arith.subf %59, %62 : vector<8x2x2xf32>
    %64 = math.exp %63 : vector<8x2x2xf32>
    %cst_26 = arith.constant dense<0.000000e+00> : vector<8x2xf32>
    %65 = vector.multi_reduction <add>, %64, %cst_26 [2] : vector<8x2x2xf32> to vector<8x2xf32>
    %66 = vector.shape_cast %65 : vector<8x2xf32> to vector<8x2x1xf32>
    %67 = vector.broadcast %66 : vector<8x2x1xf32> to vector<8x2x2xf32>
    %68 = arith.divf %64, %67 : vector<8x2x2xf32>
    "tpu.trace_start"() <{level = 10 : i32, message = "sbc,scd->sbd"}> : () -> ()
    %cst_27 = arith.constant dense<0.000000e+00> : vector<8x2x8xf32>
    %69 = tpu.matmul %68, %58, %cst_27 {dimension_numbers = #tpu.dot_dimension_numbers<[2], [1], [1], [2], [0, 0, 0, 1, 1, 2], [0], [0]>} : vector<8x2x2xf32>, vector<8x2x8xf32>, vector<8x2x8xf32> -> vector<8x2x8xf32>
    "tpu.trace_stop"() : () -> ()
    %c0_28 = arith.constant 0 : index
    %c0_29 = arith.constant 0 : index
    %c16 = arith.constant 16 : index
    %70 = vector.load %arg11[%c0_28, %c0_29, %c16] : memref<8x2x32xf32, #tpu.memory_space<vmem>>, vector<8x2x8xf32>
    tpu.vector_store %arg11[%c0_28, %c0_29, %c16], %69 {strides = array<i32>} : memref<8x2x32xf32, #tpu.memory_space<vmem>>, vector<8x2x8xf32>,
    %71 = vector.extract_strided_slice %19 {offsets = [0, 0, 24], sizes = [8, 2, 8], strides = [1, 1, 1]} : vector<8x2x96xf32> to vector<8x2x8xf32>
    %cst_30 = arith.constant 0.353553385 : f32
    %72 = vector.broadcast %cst_30 : f32 to vector<8x2x8xf32>
    %73 = arith.mulf %71, %72 : vector<8x2x8xf32>
    %74 = vector.extract_strided_slice %19 {offsets = [0, 0, 56], sizes = [8, 2, 8], strides = [1, 1, 1]} : vector<8x2x96xf32> to vector<8x2x8xf32>
    %75 = vector.extract_strided_slice %19 {offsets = [0, 0, 88], sizes = [8, 2, 8], strides = [1, 1, 1]} : vector<8x2x96xf32> to vector<8x2x8xf32>
    "tpu.trace_start"() <{level = 10 : i32, message = "sbd,scd->sbc"}> : () -> ()
    %cst_31 = arith.constant dense<0.000000e+00> : vector<8x2x2xf32>
    %76 = tpu.matmul %73, %74, %cst_31 {dimension_numbers = #tpu.dot_dimension_numbers<[2], [2], [1], [1], [0, 0, 0, 1, 1, 1], [0], [0]>} : vector<8x2x8xf32>, vector<8x2x8xf32>, vector<8x2x2xf32> -> vector<8x2x2xf32>
    "tpu.trace_stop"() : () -> ()
    %cst_32 = arith.constant dense<0xFF800000> : vector<8x2xf32>
    %77 = vector.multi_reduction <maximumf>, %76, %cst_32 [2] : vector<8x2x2xf32> to vector<8x2xf32>
    %78 = vector.shape_cast %77 : vector<8x2xf32> to vector<8x2x1xf32>
    %79 = vector.broadcast %78 : vector<8x2x1xf32> to vector<8x2x2xf32>
    %80 = arith.subf %76, %79 : vector<8x2x2xf32>
    %81 = math.exp %80 : vector<8x2x2xf32>
    %cst_33 = arith.constant dense<0.000000e+00> : vector<8x2xf32>
    %82 = vector.multi_reduction <add>, %81, %cst_33 [2] : vector<8x2x2xf32> to vector<8x2xf32>
    %83 = vector.shape_cast %82 : vector<8x2xf32> to vector<8x2x1xf32>
    %84 = vector.broadcast %83 : vector<8x2x1xf32> to vector<8x2x2xf32>
    %85 = arith.divf %81, %84 : vector<8x2x2xf32>
    "tpu.trace_start"() <{level = 10 : i32, message = "sbc,scd->sbd"}> : () -> ()
    %cst_34 = arith.constant dense<0.000000e+00> : vector<8x2x8xf32>
    %86 = tpu.matmul %85, %75, %cst_34 {dimension_numbers = #tpu.dot_dimension_numbers<[2], [1], [1], [2], [0, 0, 0, 1, 1, 2], [0], [0]>} : vector<8x2x2xf32>, vector<8x2x8xf32>, vector<8x2x8xf32> -> vector<8x2x8xf32>
    "tpu.trace_stop"() : () -> ()
    %c0_35 = arith.constant 0 : index
    %c0_36 = arith.constant 0 : index
    %c24 = arith.constant 24 : index
    %87 = vector.load %arg11[%c0_35, %c0_36, %c24] : memref<8x2x32xf32, #tpu.memory_space<vmem>>, vector<8x2x8xf32>
    tpu.vector_store %arg11[%c0_35, %c0_36, %c24], %86 {strides = array<i32>} : memref<8x2x32xf32, #tpu.memory_space<vmem>>, vector<8x2x8xf32>,
    %c0_37 = arith.constant 0 : index
    %c0_38 = arith.constant 0 : index
    %c0_39 = arith.constant 0 : index
    %88 = vector.load %arg11[%c0_37, %c0_38, %c0_39] : memref<8x2x32xf32, #tpu.memory_space<vmem>>, vector<8x2x32xf32>
    %89 = vector.shape_cast %88 : vector<8x2x32xf32> to vector<16x32xf32>
    %c0_40 = arith.constant 0 : index
    %c0_41 = arith.constant 0 : index
    %c0_42 = arith.constant 0 : index
    %90 = vector.load %arg3[%c0_40, %c0_41, %c0_42] : memref<1x32x32xf32, #tpu.memory_space<vmem>>, vector<1x32x32xf32>
    %91 = vector.shape_cast %90 : vector<1x32x32xf32> to vector<32x32xf32>
    %cst_43 = arith.constant dense<0.000000e+00> : vector<16x32xf32>
    %92 = tpu.matmul %89, %91, %cst_43 {dimension_numbers = #tpu.dot_dimension_numbers<[1], [0], [0], [1], [0, 0, 1, 1], [], []>} : vector<16x32xf32>, vector<32x32xf32>, vector<16x32xf32> -> vector<16x32xf32>
    %93 = vector.broadcast %8 : vector<1x32xf32> to vector<16x32xf32>
    %94 = arith.addf %92, %93 : vector<16x32xf32>
    %95 = arith.addf %3, %94 : vector<16x32xf32>
    %cst_44 = arith.constant dense<0.000000e+00> : vector<16xf32>
    %96 = vector.multi_reduction <add>, %95, %cst_44 [1] : vector<16x32xf32> to vector<16xf32>
    %97 = vector.shape_cast %96 : vector<16xf32> to vector<16x1xf32>
    %cst_45 = arith.constant 3.200000e+01 : f32
    %98 = vector.broadcast %cst_45 : f32 to vector<16x1xf32>
    %99 = arith.divf %97, %98 : vector<16x1xf32>
    %100 = vector.broadcast %99 : vector<16x1xf32> to vector<16x32xf32>
    %101 = arith.subf %95, %100 : vector<16x32xf32>
    %102 = arith.mulf %101, %101 : vector<16x32xf32>
    %cst_46 = arith.constant dense<0.000000e+00> : vector<16xf32>
    %103 = vector.multi_reduction <add>, %102, %cst_46 [1] : vector<16x32xf32> to vector<16xf32>
    %104 = vector.shape_cast %103 : vector<16xf32> to vector<16x1xf32>
    %cst_47 = arith.constant 3.200000e+01 : f32
    %105 = vector.broadcast %cst_47 : f32 to vector<16x1xf32>
    %106 = arith.divf %104, %105 : vector<16x1xf32>
    %cst_48 = arith.constant 9.99999974E-6 : f32
    %107 = vector.broadcast %cst_48 : f32 to vector<16x1xf32>
    %108 = arith.addf %106, %107 : vector<16x1xf32>
    %109 = math.rsqrt %108 : vector<16x1xf32>
    %110 = vector.broadcast %109 : vector<16x1xf32> to vector<16x32xf32>
    %111 = arith.mulf %101, %110 : vector<16x32xf32>
    %112 = vector.broadcast %10 : vector<1x32xf32> to vector<16x32xf32>
    %113 = arith.mulf %111, %112 : vector<16x32xf32>
    %114 = vector.broadcast %11 : vector<1x32xf32> to vector<16x32xf32>
    %115 = arith.addf %113, %114 : vector<16x32xf32>
    %c0_49 = arith.constant 0 : index
    %c0_50 = arith.constant 0 : index
    %c0_51 = arith.constant 0 : index
    %116 = vector.load %arg4[%c0_49, %c0_50, %c0_51] : memref<1x32x64xf32, #tpu.memory_space<vmem>>, vector<1x32x64xf32>
    %117 = vector.shape_cast %116 : vector<1x32x64xf32> to vector<32x64xf32>
    %cst_52 = arith.constant dense<0.000000e+00> : vector<16x64xf32>
    %118 = tpu.matmul %115, %117, %cst_52 {dimension_numbers = #tpu.dot_dimension_numbers<[1], [0], [0], [1], [0, 0, 1, 1], [], []>} : vector<16x32xf32>, vector<32x64xf32>, vector<16x64xf32> -> vector<16x64xf32>
    %119 = vector.broadcast %7 : vector<1x64xf32> to vector<16x64xf32>
    %120 = arith.addf %118, %119 : vector<16x64xf32>
    %cst_53 = arith.constant 0.000000e+00 : f32
    %121 = vector.broadcast %cst_53 : f32 to vector<16x64xf32>
    %122 = arith.maximumf %120, %121 : vector<16x64xf32>
    %c0_54 = arith.constant 0 : index
    %c0_55 = arith.constant 0 : index
    %c0_56 = arith.constant 0 : index
    %123 = vector.load %arg5[%c0_54, %c0_55, %c0_56] : memref<1x64x32xf32, #tpu.memory_space<vmem>>, vector<1x64x32xf32>
    %124 = vector.shape_cast %123 : vector<1x64x32xf32> to vector<64x32xf32>
    %cst_57 = arith.constant dense<0.000000e+00> : vector<16x32xf32>
    %125 = tpu.matmul %122, %124, %cst_57 {dimension_numbers = #tpu.dot_dimension_numbers<[1], [0], [0], [1], [0, 0, 1, 1], [], []>} : vector<16x64xf32>, vector<64x32xf32>, vector<16x32xf32> -> vector<16x32xf32>
    %126 = vector.broadcast %9 : vector<1x32xf32> to vector<16x32xf32>
    %127 = arith.addf %125, %126 : vector<16x32xf32>
    %128 = arith.addf %115, %127 : vector<16x32xf32>
    %cst_58 = arith.constant dense<0.000000e+00> : vector<16xf32>
    %129 = vector.multi_reduction <add>, %128, %cst_58 [1] : vector<16x32xf32> to vector<16xf32>
    %130 = vector.shape_cast %129 : vector<16xf32> to vector<16x1xf32>
    %cst_59 = arith.constant 3.200000e+01 : f32
    %131 = vector.broadcast %cst_59 : f32 to vector<16x1xf32>
    %132 = arith.divf %130, %131 : vector<16x1xf32>
    %133 = vector.broadcast %132 : vector<16x1xf32> to vector<16x32xf32>
    %134 = arith.subf %128, %133 : vector<16x32xf32>
    %135 = arith.mulf %134, %134 : vector<16x32xf32>
    %cst_60 = arith.constant dense<0.000000e+00> : vector<16xf32>
    %136 = vector.multi_reduction <add>, %135, %cst_60 [1] : vector<16x32xf32> to vector<16xf32>
    %137 = vector.shape_cast %136 : vector<16xf32> to vector<16x1xf32>
    %cst_61 = arith.constant 3.200000e+01 : f32
    %138 = vector.broadcast %cst_61 : f32 to vector<16x1xf32>
    %139 = arith.divf %137, %138 : vector<16x1xf32>
    %cst_62 = arith.constant 9.99999974E-6 : f32
    %140 = vector.broadcast %cst_62 : f32 to vector<16x1xf32>
    %141 = arith.addf %139, %140 : vector<16x1xf32>
    %142 = math.rsqrt %141 : vector<16x1xf32>
    %143 = vector.broadcast %142 : vector<16x1xf32> to vector<16x32xf32>
    %144 = arith.mulf %134, %143 : vector<16x32xf32>
    %145 = vector.broadcast %12 : vector<1x32xf32> to vector<16x32xf32>
    %146 = arith.mulf %144, %145 : vector<16x32xf32>
    %147 = vector.broadcast %13 : vector<1x32xf32> to vector<16x32xf32>
    %148 = arith.addf %146, %147 : vector<16x32xf32>
    %c0_63 = arith.constant 0 : index
    %c0_64 = arith.constant 0 : index
    %149 = vector.load %arg10[%c0_63, %c0_64] : memref<16x32xf32, #tpu.memory_space<vmem>>, vector<16x32xf32>
    tpu.vector_store %arg10[%c0_63, %c0_64], %148 {strides = array<i32>} : memref<16x32xf32, #tpu.memory_space<vmem>>, vector<16x32xf32>,
    %c1_i32 = arith.constant 1 : i32
    %150 = arith.cmpi eq, %arg0, %c1_i32 : i32
    %151 = arith.extui %150 : i1 to i32
    %c0_i32_65 = arith.constant 0 : i32
    %152 = arith.cmpi ne, %151, %c0_i32_65 : i32
    scf.if %152 {
      %c0_66 = arith.constant 0 : index
      %c0_67 = arith.constant 0 : index
      %153 = vector.load %arg7[%c0_66, %c0_67] : memref<32x128xf32, #tpu.memory_space<vmem>>, vector<32x128xf32>
      %cst_68 = arith.constant dense<0.000000e+00> : vector<16x128xf32>
      %154 = tpu.matmul %148, %153, %cst_68 {dimension_numbers = #tpu.dot_dimension_numbers<[1], [0], [0], [1], [0, 0, 1, 1], [], []>} : vector<16x32xf32>, vector<32x128xf32>, vector<16x128xf32> -> vector<16x128xf32>
      %c0_69 = arith.constant 0 : index
      %c0_70 = arith.constant 0 : index
      %155 = vector.load %arg8[%c0_69, %c0_70] : memref<1x128xf32, #tpu.memory_space<vmem>>, vector<1x128xf32>
      %156 = vector.broadcast %155 : vector<1x128xf32> to vector<16x128xf32>
      %157 = arith.addf %154, %156 : vector<16x128xf32>
      %c0_71 = arith.constant 0 : index
      %c0_72 = arith.constant 0 : index
      %158 = vector.load %arg9[%c0_71, %c0_72] : memref<16x128xf32, #tpu.memory_space<vmem>>, vector<16x128xf32>
      tpu.vector_store %arg9[%c0_71, %c0_72], %157 {strides = array<i32>} : memref<16x128xf32, #tpu.memory_space<vmem>>, vector<16x128xf32>,
    } else {
    }
    return
  }
  func.func @transform_0(%arg0: i32) -> (i32, i32) {
    %c0_i32 = arith.constant 0 : i32
    %c0_i32_0 = arith.constant 0 : i32
    %c0_i32_1 = arith.constant 0 : i32
    return %c0_i32, %c0_i32_0 : i32, i32
  }
  func.func @transform_1(%arg0: i32) -> (i32, i32, i32) {
    %c0_i32 = arith.constant 0 : i32
    %c0_i32_0 = arith.constant 0 : i32
    %c0_i32_1 = arith.constant 0 : i32
    return %arg0, %c0_i32, %c0_i32_0 : i32, i32, i32
  }
  func.func @transform_2(%arg0: i32) -> (i32, i32, i32) {
    %c0_i32 = arith.constant 0 : i32
    %c0_i32_0 = arith.constant 0 : i32
    %c0_i32_1 = arith.constant 0 : i32
    return %arg0, %c0_i32, %c0_i32_0 : i32, i32, i32
  }
  func.func @transform_3(%arg0: i32) -> (i32, i32, i32) {
    %c0_i32 = arith.constant 0 : i32
    %c0_i32_0 = arith.constant 0 : i32
    %c0_i32_1 = arith.constant 0 : i32
    return %arg0, %c0_i32, %c0_i32_0 : i32, i32, i32
  }
  func.func @transform_4(%arg0: i32) -> (i32, i32, i32) {
    %c0_i32 = arith.constant 0 : i32
    %c0_i32_0 = arith.constant 0 : i32
    %c0_i32_1 = arith.constant 0 : i32
    return %arg0, %c0_i32, %c0_i32_0 : i32, i32, i32
  }
  func.func @transform_5(%arg0: i32) -> (i32, i32, i32) {
    %c0_i32 = arith.constant 0 : i32
    %c0_i32_0 = arith.constant 0 : i32
    %c0_i32_1 = arith.constant 0 : i32
    return %arg0, %c0_i32, %c0_i32_0 : i32, i32, i32
  }
  func.func @transform_6(%arg0: i32) -> (i32, i32) {
    %c0_i32 = arith.constant 0 : i32
    %c0_i32_0 = arith.constant 0 : i32
    %c0_i32_1 = arith.constant 0 : i32
    return %c0_i32, %c0_i32_0 : i32, i32
  }
  func.func @transform_7(%arg0: i32) -> (i32, i32) {
    %c0_i32 = arith.constant 0 : i32
    %c0_i32_0 = arith.constant 0 : i32
    %c0_i32_1 = arith.constant 0 : i32
    return %c0_i32, %c0_i32_0 : i32, i32
  }
  func.func @transform_8(%arg0: i32) -> (i32, i32) {
    %c0_i32 = arith.constant 0 : i32
    %c0_i32_0 = arith.constant 0 : i32
    %c0_i32_1 = arith.constant 0 : i32
    return %c0_i32, %c0_i32_0 : i32, i32
  }
}

</mosaic_0001>

<bundles_post_ra>
// kernel: simple_transformer_forward.1
= control target key start
LH: loop header
LB: loop body
LE: loop exit
PB: predicated region body
PF: predicated region fallthrough
CT: control target
= control target key end

     0   :  { %s7640_s27 = smov 0   ;;  %s8674_s0 = inlined_call_operand.vmem [shape: f32[16,32], index: 0, kind: input, shape index: {}]   ;;  %s8675_s1 = inlined_call_operand.vmem [shape: f32[2,32,96], index: 1, kind: input, shape index: {}]   ;;  %s8676_s2 = inlined_call_operand.vmem [shape: f32[2,32,32], index: 2, kind: input, shape index: {}]   ;;  %s8677_s3 = inlined_call_operand.vmem [shape: f32[2,32,64], index: 3, kind: input, shape index: {}]   ;;  %s8678_s4 = inlined_call_operand.vmem [shape: f32[2,64,32], index: 4, kind: input, shape index: {}]   ;;  %s8679_s5 = inlined_call_operand.vmem [shape: f32[2,8,96], index: 5, kind: input, shape index: {}]   ;;  %s8680_s6 = inlined_call_operand.vmem [shape: f32[32,128], index: 6, kind: input, shape index: {}]   ;;  %s8681_s7 = inlined_call_operand.vmem [shape: f32[1,128], index: 7, kind: input, shape index: {}]   ;;  %s8682_s8 = inlined_call_operand.vmem [shape: f32[16,128], index: 8, kind: output, shape index: {}]  }
   0x1 LB: > { %s7646_s28 = sadd.s32 4294967295, %s7576_s27   ;;  %p6656_p0 = scmp.ge.s32.totalorder %s7576_s27, 1  ;;  %s7576_s27 = sphi %s7640_s27, %s18_s27  }
   0x2   : > { %p296_p1 = scmp.lt.s32.totalorder %s7576_s27, 3 }
   0x4   : > { %p297_p2 = pnand %p6656_p0, %p296_p1 }
   0x5   : > { %p344_p3 = scmp.lt.s32.totalorder (!%p297_p2), %s7646_s28, 1  ;;  %p6666_p4 = scmp.ne.s32.totalorder (!%p297_p2), %s7646_s28, 0 }
   0x6   : > { %300 = sbr.rel (%p297_p2) target bundleno = 4436 (0x1154), region = 52 }
   0xd   : > { %s345_s29 = scalar_select %p344_p3, %s7646_s28, 1 }
   0xe   : > { %371 = sbr.rel (%p6666_p4) target bundleno = 21 (0x15), region = 56  ;;  %v372_v0 = vld [vmem:[%s8674_s0] sm:$0xff] (!%p6666_p4)  ;;  %vm374_vm0 = vcmask (!%p6666_p4), 261120   ;;  %v373_v1 = vld [vmem:[%s8674_s0 + $0x8] sm:$0xff] (!%p6666_p4) }
   0xf   : > { %s6809_s30 = sshll.u32 %s345_s29, 5  ;;  %s6812_s9 = sshll.u32 %s345_s29, 6  ;;  %375 = vst.msk [vmem:[#allocation2] sm:$0xff] (!%p6666_p4), %vm374_vm0, %v372_v0  ;;  %376 = vst.msk [vmem:[#allocation2 + $0x8] sm:$0xff] (!%p6666_p4), %vm374_vm0, %v373_v1 }
  0x10   : > { %s348_s12 = scalar_lea.vmem %s8675_s1, %s6809_s30  ;;  %s7658_s15 = scalar_lea.vmem %s8676_s2, %s6809_s30 }
  0x11   : > { %s7663_s18 = scalar_lea.vmem %s8677_s3, %s6809_s30  ;;  %s7668_s21 = scalar_lea.vmem %s8678_s4, %s6812_s9 }
  0x12   : > { %s6665_s22 = sshll.u32 %s345_s29, 3 }
  0x13   : > { %s7673_s25 = scalar_lea.vmem %s8679_s5, %s6665_s22 }
  0x15 PF: > { %v380_v2 = vld [vmem:[%s348_s12] sm:$0xff]  ;;  %v381_v3 = vld [vmem:[%s348_s12 + $0x8] sm:$0xff]  ;;  %v382_v4 = vld [vmem:[%s348_s12 + $0x10] sm:$0xff]  ;;  %vm388_vm1 = vcmask 261120   ;;  %v7578_v10 = vmov 0.0   ;;  %v384_v11 = vlaneseq  ;;  %vm7580_vm2 = vmmov 0  }
  0x16   : > { %v7358_v5 = vpack.c.bf16 %v381_v3, %v380_v2  ;;  %v383_v6 = vld [vmem:[%s348_s12 + $0x18] sm:$0xff]  ;;  %v377_v7 = vld [vmem:[#allocation2] sm:$0xff]  ;;  %6996 = vmatprep.subr.mxu0 %v7578_v10  ;;  %v7579_v13 = vmov 1983009808   ;;  %v379_v16 = vld [vmem:[%s7673_s25] sm:$0xff]  ;;  %6998 = vmatprep.mubr.msk.f32.mxu0 %vm7580_vm2, %v7578_v10  ;;  %s7581_s29 = smov 96  }
  0x17   : > { %v7362_v8 = vpack.c.bf16 %v383_v6, %v382_v4  ;;  %6983 = vmatprep.mubr.msk.f32.mxu1 %vm388_vm1, %v377_v7  ;;  %v378_v9 = vld [vmem:[#allocation2 + $0x8] sm:$0xff]  ;;  %v7686_v12 = vshrl.u32 %v384_v11, 7  ;;  %v474_v14 = vunpack.c.l.s4 %v7579_v13  ;;  %vm531_vm3 = vcmask 64512   ;;  %s7582_s9 = smov 64   ;;  %s7583_s12 = smov 88  }
  0x18   : > { %7359 = vmatprep.subr.bf16.mxu1 %v7358_v5  ;;  %vm1195_vm4 = vcmask 9216   ;;  %s7584_s13 = smov 120   ;;  %vm1290_vm5 = vcmask 1041408   ;;  %vm1286_vm6 = vcmask 15360   ;;  %vm1902_vm7 = vcmask 58368   ;;  %s7585_s14 = smov 56  }
  0x19   : > { %7361 = vmatpush3.bf16.msra.mxu1 %v7358_v5  ;;  %v386_v15 = vsub.s32 0, %v7686_v12  ;;  %v475_v17 = vunpack.c.0.s8 %v474_v14  ;;  %s7586_s16 = smov 80   ;;  %s7587_s17 = smov 112   ;;  %vm3327_vm8 = vcmask 123968   ;;  %vm4696_vm9 = vcmask 189568  }
  0x1a   : > { %7363 = vmatprep.subr.bf16.mxu1 %v7362_v8  ;;  %s7588_s19 = smov 48   ;;  %s7589_s20 = smov 72   ;;  %vm6065_vm10 = vcmask 255168   ;;  %vm6355_vm11 = vcmask 523264  }
  0x1b   : > { %v387_v18 = vrot.slane %v379_v16, %v386_v15  ;;  %v7695_v20 = vsub.s32 %v475_v17, %v7686_v12  ;;  %s7590_s22 = smov 104   ;;  %s7591_s23 = smov 40  }
  0x1c   : > { %s7592_s24 = smov 8   ;;  %s7593_s26 = smov 16  }
  0x1d   : > { %7365 = vmatpush3.bf16.msra.mxu1 %v7362_v8  ;;  %s7594_s10 = smov 24   ;;  %p6803_p5 = scmp.ne.s32.totalorder %s7646_s28, 1 }
  0x1e   : > { %6986 = vmatprep.subr.mxu1 %v7578_v10 }
  0x20   : > { %6984 = vmatmul.mubr.msk.f32.vlgmr.msra.gmra.mrb[0].mxu1 %vm388_vm1, %v378_v9 }
  0x21   : > { %6988 = vmatprep.mubr.msk.f32.mxu1 %vm7580_vm2, %v7578_v10 }
  0xf3   : > { %v6985_v19 = vpop.f32.mrb[0].mxu1 }
  0xf4   : > { %v461_v21 = vpop.f32.mrb[1].mxu1  ;;  %v467_v25 = vadd.f32 %v6985_v19, %v387_v18 }
  0xf5   : > { %v462_v22 = vadd.f32 %v461_v21, %v387_v18 }
  0xf6   : > { %v489_v29 = vcombine.high %v467_v25, %v467_v25  ;;  %v496_v30 = vrot.slane %v467_v25, %v7695_v20 }
  0xf7   : > { %v472_v23 = vcombine.high %v462_v22, %v462_v22  ;;  %v479_v24 = vrot.slane %v462_v22, %v7695_v20 }
  0xf8   : > { %v503_v34 = vrot.slane %v489_v29, %v7695_v20  ;;  %v504_v35 = vcombine.high %v496_v30, %v496_v30  ;;  %v7717_v37 = vrot.slane %v496_v30, %v7695_v20  ;;  %v7757_v50 = vmul.f32 0.35355338, %v496_v30 }
  0xf9   : > { %v486_v26 = vrot.slane %v472_v23, %v7695_v20  ;;  %v487_v27 = vcombine.high %v479_v24, %v479_v24  ;;  %v7700_v28 = vrot.slane %v479_v24, %v7695_v20  ;;  %v7734_v43 = vmul.f32 0.35355338, %v479_v24 }
  0xfa   : > { %v505_v38 = vcombine.high %v503_v34, %v503_v34  ;;  %v7722_v39 = vrot.slane %v504_v35, %v7695_v20  ;;  %v7725_v40 = vrot.slane %v503_v34, %v7695_v20  ;;  %v7771_v54 = vmul.f32 0.35355338, %v504_v35 }
  0xfb   : > { %529 = vrot.lane.b32.xlu0 %v7700_v28, %s7581_s29  ;;  %v488_v31 = vcombine.high %v486_v26, %v486_v26  ;;  %v7705_v32 = vrot.slane %v486_v26, %v7695_v20  ;;  %v7708_v33 = vrot.slane %v487_v27, %v7695_v20  ;;  %v7741_v46 = vmul.f32 0.35355338, %v486_v26 }
  0xfc   : > { %v7730_v41 = vrot.slane %v505_v38, %v7695_v20  ;;  %v7745_v47 = vmul.f32 0.35355338, %v487_v27  ;;  %v7773_v55 = vmul.f32 0.35355338, %v503_v34  ;;  %v7788_v57 = vmul.f32 0.35355338, %v505_v38 }
  0xfd   : > { %698 = vrot.lane.b32.xlu1 %v7705_v32, %s7581_s29  ;;  %v7714_v36 = vrot.slane %v488_v31, %v7695_v20  ;;  %v7759_v51 = vmul.f32 0.35355338, %v488_v31  ;;  %v7823_v22 = vrot.slane %v7734_v43, %v7695_v20 }
  0xfe   : > { %v7819_v21 = vrot.slane %v7745_v47, %v7695_v20 }
  0xff   : > { %614 = vrot.lane.b32.xlu0 %v7708_v33, %s7581_s29 }
 0x101   : > { %782 = vrot.lane.b32.xlu1 %v7714_v36, %s7581_s29 }
 0x103   : > { %866 = vrot.lane.b32.xlu0 %v7717_v37, %s7581_s29 }
 0x105   : > { %950 = vrot.lane.b32.xlu1 %v7722_v39, %s7581_s29 }
 0x107   : > { %1034 = vrot.lane.b32.xlu0 %v7725_v40, %s7581_s29 }
 0x109   : > { %1118 = vrot.lane.b32.xlu1 %v7730_v41, %s7581_s29 }
 0x16d   : > { %v530_v42 = vpop.permute.xlu0 %529 }
 0x16e   : > { %6987 = vmatpush3.xpose.msk.msra.mxu1 %vm531_vm3, %v530_v42 }
 0x16f   : > { %6991 = vmatprep.subr.mxu1 %v7578_v10  ;;  %v699_v44 = vpop.permute.xlu1 %698 }
 0x170   : > { %6997 = vmatpush3.xpose.msk.msra.mxu0 %vm531_vm3, %v699_v44 }
 0x171   : > { %6989 = vmatmul.mubr.msk.f32.vlgmr.msra.gmra.mrb[2].mxu1 %vm531_vm3, %v7734_v43  ;;  %v615_v45 = vpop.permute.xlu0 %614  ;;  %7006 = vmatprep.subr.mxu0 %v7578_v10 }
 0x172   : > { %6992 = vmatpush3.xpose.msk.msra.mxu1 %vm531_vm3, %v615_v45  ;;  %6993 = vmatprep.mubr.msk.f32.mxu1 %vm7580_vm2, %v7578_v10 }
 0x173   : > { %7001 = vmatprep.subr.mxu1 %v7578_v10  ;;  %6999 = vmatmul.mubr.msk.f32.vlgmr.msra.gmra.mrb[0].mxu0 %vm531_vm3, %v7741_v46  ;;  %v783_v48 = vpop.permute.xlu1 %782 }
 0x174   : > { %7008 = vmatprep.mubr.msk.f32.mxu0 %vm7580_vm2, %v7578_v10 }
 0x175   : > { %v867_v49 = vpop.permute.xlu0 %866  ;;  %6994 = vmatmul.mubr.msk.f32.vlgmr.msra.gmra.mrb[4].mxu1 %vm531_vm3, %v7745_v47 }
 0x176   : > { %7002 = vmatpush3.xpose.msk.msra.mxu1 %vm531_vm3, %v783_v48  ;;  %7007 = vmatpush3.xpose.msk.msra.mxu0 %vm531_vm3, %v867_v49 }
 0x177   : > { %7003 = vmatprep.mubr.msk.f32.mxu1 %vm7580_vm2, %v7578_v10  ;;  %7011 = vmatprep.subr.mxu1 %v7578_v10  ;;  %v951_v52 = vpop.permute.xlu1 %950 }
 0x178   : > { %7016 = vmatprep.subr.mxu0 %v7578_v10 }
 0x179   : > { %v1035_v53 = vpop.permute.xlu0 %1034  ;;  %7004 = vmatmul.mubr.msk.f32.vlgmr.msra.gmra.mrb[6].mxu1 %vm531_vm3, %v7759_v51  ;;  %7009 = vmatmul.mubr.msk.f32.vlgmr.msra.gmra.mrb[2].mxu0 %vm531_vm3, %v7757_v50 }
 0x17a   : > { %7012 = vmatpush3.xpose.msk.msra.mxu1 %vm531_vm3, %v951_v52  ;;  %7017 = vmatpush3.xpose.msk.msra.mxu0 %vm531_vm3, %v1035_v53 }
 0x17b   : > { %7013 = vmatprep.mubr.msk.f32.mxu1 %vm7580_vm2, %v7578_v10  ;;  %7018 = vmatprep.mubr.msk.f32.mxu0 %vm7580_vm2, %v7578_v10  ;;  %v1119_v56 = vpop.permute.xlu1 %1118 }
 0x17c   : > { %7021 = vmatprep.subr.mxu1 %v7578_v10  ;;  %7026 = vmatprep.subr.mxu0 %v7578_v10 }
 0x17d   : > { %7014 = vmatmul.mubr.msk.f32.vlgmr.msra.gmra.mrb[8].mxu1 %vm531_vm3, %v7771_v54  ;;  %7019 = vmatmul.mubr.msk.f32.vlgmr.msra.gmra.mrb[4].mxu0 %vm531_vm3, %v7773_v55 }
 0x17e   : > { %7022 = vmatpush3.xpose.msk.msra.mxu1 %vm531_vm3, %v1119_v56  ;;  %7023 = vmatprep.mubr.msk.f32.mxu1 %vm7580_vm2, %v7578_v10 }
 0x17f   : > { %7031 = vmatprep.subr.mxu1 %v7578_v10  ;;  %7028 = vmatprep.mubr.msk.f32.mxu0 %vm7580_vm2, %v7578_v10 }
 0x181   : > { %7024 = vmatmul.mubr.msk.f32.vlgmr.msra.gmra.mrb[10].mxu1 %vm531_vm3, %v7788_v57 }
 0x182   : > { %7033 = vmatprep.mubr.msk.f32.mxu1 %vm7580_vm2, %v7578_v10 }
 0x244   : > { %v603_v58 = vpop.f32.mrb[2].mxu1 }
 0x245   : > { %v6990_v59 = vpop.f32.mrb[3].mxu1  ;;  %v1196_v60 = vsel %vm1195_vm4, %v603_v58, -inf }
 0x246   : > { %1197 = vmax.xlane.f32.xlu0 %v1196_v60  ;;  %v771_v61 = vpop.f32.mrb[0].mxu0 }
 0x247   : > { %v7000_v62 = vpop.f32.mrb[1].mxu0  ;;  %v1202_v1 = vsel %vm1195_vm4, %v771_v61, -inf }
 0x248   : > { %v687_v63 = vpop.f32.mrb[4].mxu1 }
 0x249   : > { %v6995_v0 = vpop.f32.mrb[5].mxu1  ;;  %v1199_v2 = vsel %vm1195_vm4, %v687_v63, -inf }
 0x24a   : > { %1203 = vmax.xlane.f32.xlu0 %v1202_v1  ;;  %1200 = vmax.xlane.f32.xlu1 %v1199_v2 }
 0x24c   : > { %v855_v3 = vpop.f32.mrb[6].mxu1  ;;  %v939_v4 = vpop.f32.mrb[2].mxu0 }
 0x24d   : > { %v7005_v5 = vpop.f32.mrb[7].mxu1  ;;  %v7010_v6 = vpop.f32.mrb[3].mxu0  ;;  %v1208_v7 = vsel %vm1195_vm4, %v939_v4, -inf  ;;  %v1205_v8 = vsel %vm1195_vm4, %v855_v3, -inf }
 0x24e   : > { %1209 = vmax.xlane.f32.xlu1 %v1208_v7  ;;  %1206 = vmax.xlane.f32.xlu0 %v1205_v8 }
 0x250   : > { %v1023_v9 = vpop.f32.mrb[8].mxu1  ;;  %v1107_v11 = vpop.f32.mrb[4].mxu0 }
 0x251   : > { %v7015_v13 = vpop.f32.mrb[9].mxu1  ;;  %v7020_v14 = vpop.f32.mrb[5].mxu0  ;;  %v1214_v15 = vsel %vm1195_vm4, %v1107_v11, -inf  ;;  %v1211_v16 = vsel %vm1195_vm4, %v1023_v9, -inf }
 0x252   : > { %1215 = vmax.xlane.f32.xlu1 %v1214_v15  ;;  %1212 = vmax.xlane.f32.xlu0 %v1211_v16 }
 0x254   : > { %v1191_v17 = vpop.f32.mrb[10].mxu1 }
 0x255   : > { %v7025_v18 = vpop.f32.mrb[11].mxu1  ;;  %v1217_v19 = vsel %vm1195_vm4, %v1191_v17, -inf }
 0x256   : > { %1218 = vmax.xlane.f32.xlu0 %v1217_v19  ;;  %v7879_v18 = vrot.slane %v7771_v54, %v7695_v20  ;;  %v7885_v19 = vrot.slane %v7741_v46, %v7695_v20  ;;  %v7901_v46 = vrot.slane %v7757_v50, %v7695_v20  ;;  %v7909_v54 = vrot.slane %v7773_v55, %v7695_v20 }
 0x263   : > { %1284 = vrot.lane.b32.xlu1 %v7700_v28, %s7582_s9 }
 0x267   : > { %1440 = vrot.lane.b32.xlu1 %v7705_v32, %s7582_s9 }
 0x26b   : > { %1517 = vrot.lane.b32.xlu1 %v7714_v36, %s7582_s9 }
 0x26c   : > { %1363 = vrot.lane.b32.xlu0 %v7708_v33, %s7582_s9 }
 0x26f   : > { %1671 = vrot.lane.b32.xlu1 %v7722_v39, %s7582_s9 }
 0x270   : > { %1594 = vrot.lane.b32.xlu0 %v7717_v37, %s7582_s9 }
 0x273   : > { %1825 = vrot.lane.b32.xlu1 %v7730_v41, %s7582_s9 }
 0x274   : > { %1748 = vrot.lane.b32.xlu0 %v7725_v40, %s7582_s9 }
 0x277   : > { %2005 = vrot.lane.b32.xlu1 %v7708_v33, %s7583_s12 }
 0x278   : > { %1920 = vrot.lane.b32.xlu0 %v7700_v28, %s7583_s12 }
 0x27b   : > { %2003 = vrot.lane.b32.xlu1 %v7819_v21, %s7584_s13 }
 0x27c   : > { %1918 = vrot.lane.b32.xlu0 %v7823_v22, %s7584_s13 }
 0x27f   : > { %2175 = vrot.lane.b32.xlu1 %v7714_v36, %s7583_s12 }
 0x280   : > { %2090 = vrot.lane.b32.xlu0 %v7705_v32, %s7583_s12 }
 0x2d3   : > { %v1198_v23 = vpop.xlane.xlu0 %1197 }
 0x2d4   : > { %v1220_v24 = vsub.f32 %v603_v58, %v1198_v23 }
 0x2d6   : > { %v1228_v25 = vmul.f32 1.442695, %v1220_v24 }
 0x2d7   : > { %v1204_v26 = vpop.xlane.xlu0 %1203  ;;  %v1201_v27 = vpop.xlane.xlu1 %1200 }
 0x2d8   : > { %7431 = vpow2.f32 %v1228_v25  ;;  %v1222_v29 = vsub.f32 %v771_v61, %v1204_v26  ;;  %v1221_v30 = vsub.f32 %v687_v63, %v1201_v27 }
 0x2da   : > { %v1232_v31 = vmul.f32 1.442695, %v1222_v29  ;;  %v1230_v34 = vmul.f32 1.442695, %v1221_v30 }
 0x2db   : > { %v1210_v35 = vpop.xlane.xlu1 %1209  ;;  %v1207_v38 = vpop.xlane.xlu0 %1206 }
 0x2dc   : > { %7433 = vpow2.f32 %v1232_v31  ;;  %v1224_v42 = vsub.f32 %v939_v4, %v1210_v35  ;;  %v1223_v43 = vsub.f32 %v855_v3, %v1207_v38 }
 0x2dd   : > { %7435 = vpow2.f32 %v1230_v34 }
 0x2de   : > { %v1236_v44 = vmul.f32 1.442695, %v1224_v42  ;;  %v1234_v45 = vmul.f32 1.442695, %v1223_v43 }
 0x2df   : > { %v1216_v47 = vpop.xlane.xlu1 %1215  ;;  %v1213_v48 = vpop.xlane.xlu0 %1212 }
 0x2e0   : > { %7437 = vpow2.f32 %v1236_v44  ;;  %v1226_v49 = vsub.f32 %v1107_v11, %v1216_v47  ;;  %v1225_v52 = vsub.f32 %v1023_v9, %v1213_v48 }
 0x2e1   : > { %7439 = vpow2.f32 %v1234_v45 }
 0x2e2   : > { %v7833_v53 = vpop.eup %7431  ;;  %v1240_v56 = vmul.f32 1.442695, %v1226_v49  ;;  %v1238_v58 = vmul.f32 1.442695, %v1225_v52 }
 0x2e3   : > { %v1285_v59 = vpop.permute.xlu1 %1284  ;;  %v1219_v60 = vpop.xlane.xlu0 %1218  ;;  %v1244_v61 = vsel %vm1195_vm4, %v7833_v53, 0.0 }
 0x2e4   : > { %7441 = vpow2.f32 %v1240_v56  ;;  %v1227_v62 = vsub.f32 %v1191_v17, %v1219_v60  ;;  %1245 = vadd.xlane.f32.xlu1 %v1244_v61  ;;  %7027 = vmatpush3.msk.msra.mxu0 %vm1290_vm5, %v1285_v59  ;;  %v7871_v17 = vrot.slane %v7759_v51, %v7695_v20  ;;  %v7895_v51 = vrot.slane %v7788_v57, %v7695_v20 }
 0x2e5   : > { %7443 = vpow2.f32 %v1238_v58  ;;  %7036 = vmatprep.subr.mxu0 %v7578_v10 }
 0x2e6   : > { %v7839_v63 = vpop.eup %7433  ;;  %v1242_v0 = vmul.f32 1.442695, %v1227_v62 }
 0x2e7   : > { %v7841_v1 = vpop.eup %7435  ;;  %v1364_v2 = vpop.permute.xlu0 %1363  ;;  %v1250_v3 = vsel %vm1195_vm4, %v7839_v63, 0.0 }
 0x2e8   : > { %7445 = vpow2.f32 %v1242_v0  ;;  %1251 = vadd.xlane.f32.xlu1 %v1250_v3  ;;  %v1247_v4 = vsel %vm1195_vm4, %v7841_v1, 0.0  ;;  %7032 = vmatpush3.msk.msra.mxu1 %vm1290_vm5, %v1364_v2  ;;  %v1441_v57 = vpop.permute.xlu1 %1440 }
 0x2e9   : > { %1248 = vadd.xlane.f32.xlu0 %v1247_v4  ;;  %7041 = vmatprep.subr.mxu1 %v7578_v10 }
 0x2ea   : > { %v7849_v5 = vpop.eup %7437 }
 0x2eb   : > { %v7851_v6 = vpop.eup %7439  ;;  %v1256_v7 = vsel %vm1195_vm4, %v7849_v5, 0.0  ;;  %v1595_v25 = vpop.permute.xlu0 %1594 }
 0x2ec   : > { %1257 = vadd.xlane.f32.xlu1 %v1256_v7  ;;  %v1253_v8 = vsel %vm1195_vm4, %v7851_v6, 0.0  ;;  %v1518_v23 = vpop.permute.xlu1 %1517 }
 0x2ed   : > { %1254 = vadd.xlane.f32.xlu0 %v1253_v8 }
 0x2ee   : > { %v7857_v9 = vpop.eup %7441 }
 0x2ef   : > { %v7859_v11 = vpop.eup %7443  ;;  %v1262_v13 = vsel %vm1195_vm4, %v7857_v9, 0.0  ;;  %v1749_v50 = vpop.permute.xlu0 %1748 }
 0x2f0   : > { %1263 = vadd.xlane.f32.xlu1 %v1262_v13  ;;  %v1259_v14 = vsel %vm1195_vm4, %v7859_v11, 0.0  ;;  %v1672_v24 = vpop.permute.xlu1 %1671 }
 0x2f1   : > { %1260 = vadd.xlane.f32.xlu0 %v1259_v14 }
 0x2f2   : > { %v7865_v15 = vpop.eup %7445 }
 0x2f3   : > { %v1265_v16 = vsel %vm1195_vm4, %v7865_v15, 0.0  ;;  %v7917_v29 = vpop.permute.xlu0 %1920 }
 0x2f4   : > { %v7913_v26 = vpop.permute.xlu1 %1825 }
 0x2f5   : > { %1266 = vadd.xlane.f32.xlu0 %v1265_v16 }
 0x2f7   : > { %v7921_v31 = vpop.permute.xlu0 %1918 }
 0x2f8   : > { %v7915_v27 = vpop.permute.xlu1 %2005 }
 0x2fb   : > { %v7925_v35 = vpop.permute.xlu0 %2090 }
 0x2fc   : > { %v7919_v30 = vpop.permute.xlu1 %2003 }
 0x300   : > { %v7923_v55 = vpop.permute.xlu1 %2175 }
 0x301   : > { %2173 = vrot.lane.b32.xlu1 %v7871_v17, %s7584_s13 }
 0x305   : > { %2345 = vrot.lane.b32.xlu1 %v7722_v39, %s7583_s12 }
 0x309   : > { %2343 = vrot.lane.b32.xlu1 %v7879_v18, %s7584_s13 }
 0x30b   : > { %2088 = vrot.lane.b32.xlu0 %v7885_v19, %s7584_s13 }
 0x30d   : > { %2515 = vrot.lane.b32.xlu1 %v7730_v41, %s7583_s12 }
 0x30f   : > { %2260 = vrot.lane.b32.xlu0 %v7717_v37, %s7583_s12 }
 0x311   : > { %2513 = vrot.lane.b32.xlu1 %v7895_v51, %s7584_s13 }
 0x313   : > { %2258 = vrot.lane.b32.xlu0 %v7901_v46, %s7584_s13 }
 0x317   : > { %2430 = vrot.lane.b32.xlu0 %v7725_v40, %s7583_s12 }
 0x31b   : > { %2428 = vrot.lane.b32.xlu0 %v7909_v54, %s7584_s13 }
 0x371   : > { %v1246_v34 = vpop.xlane.xlu1 %1245 }
 0x372   : > { %7447 = vrcp.f32 %v1246_v34 }
 0x375   : > { %v1252_v38 = vpop.xlane.xlu1 %1251 }
 0x376   : > { %7449 = vrcp.f32 %v1252_v38  ;;  %v1249_v42 = vpop.xlane.xlu0 %1248 }
 0x377   : > { %7451 = vrcp.f32 %v1249_v42 }
 0x379   : > { %v1258_v43 = vpop.xlane.xlu1 %1257 }
 0x37a   : > { %7453 = vrcp.f32 %v1258_v43  ;;  %v1255_v44 = vpop.xlane.xlu0 %1254 }
 0x37b   : > { %7455 = vrcp.f32 %v1255_v44 }
 0x37c   : > { %v7448_v45 = vpop.eup %7447 }
 0x37d   : > { %v1264_v47 = vpop.xlane.xlu1 %1263  ;;  %v1269_v48 = vmul.f32 %v7448_v45, %v7833_v53 }
 0x37e   : > { %7457 = vrcp.f32 %v1264_v47  ;;  %v1261_v49 = vpop.xlane.xlu0 %1260 }
 0x37f   : > { %7459 = vrcp.f32 %v1261_v49  ;;  %7029 = vmatmul.mubr.msk.f32.vlgmr.msra.gmra.mrb[6].mxu0 %vm1286_vm6, %v1269_v48 }
 0x380   : > { %v7450_v52 = vpop.eup %7449  ;;  %7037 = vmatpush3.msk.msra.mxu0 %vm1290_vm5, %v1441_v57  ;;  %7038 = vmatprep.mubr.msk.f32.mxu0 %vm7580_vm2, %v7578_v10 }
 0x381   : > { %v7452_v56 = vpop.eup %7451  ;;  %7046 = vmatprep.subr.mxu0 %v7578_v10  ;;  %v1273_v58 = vmul.f32 %v7450_v52, %v7839_v63  ;;  %v2174_v4 = vpop.permute.xlu1 %2173 }
 0x382   : > { %v1267_v59 = vpop.xlane.xlu0 %1266  ;;  %v1271_v60 = vmul.f32 %v7452_v56, %v7841_v1 }
 0x383   : > { %7461 = vrcp.f32 %v1267_v59  ;;  %7039 = vmatmul.mubr.msk.f32.vlgmr.msra.gmra.mrb[8].mxu0 %vm1286_vm6, %v1273_v58 }
 0x384   : > { %v7454_v53 = vpop.eup %7453  ;;  %7034 = vmatmul.mubr.msk.f32.vlgmr.msra.gmra.mrb[12].mxu1 %vm1286_vm6, %v1271_v60  ;;  %7047 = vmatpush3.msk.msra.mxu0 %vm1290_vm5, %v1595_v25 }
 0x385   : > { %v7456_v61 = vpop.eup %7455  ;;  %7042 = vmatpush3.msk.msra.mxu1 %vm1290_vm5, %v1518_v23  ;;  %7043 = vmatprep.mubr.msk.f32.mxu1 %vm7580_vm2, %v7578_v10  ;;  %v1277_v62 = vmul.f32 %v7454_v53, %v7849_v5 }
 0x386   : > { %v2089_v63 = vpop.permute.xlu0 %2088  ;;  %7048 = vmatprep.mubr.msk.f32.mxu0 %vm7580_vm2, %v7578_v10  ;;  %7051 = vmatprep.subr.mxu1 %v7578_v10  ;;  %v1275_v0 = vmul.f32 %v7456_v61, %v7851_v6 }
 0x387   : > { %7056 = vmatprep.subr.mxu0 %v7578_v10  ;;  %7049 = vmatmul.mubr.msk.f32.vlgmr.msra.gmra.mrb[10].mxu0 %vm1286_vm6, %v1277_v62 }
 0x388   : > { %v7458_v1 = vpop.eup %7457  ;;  %7044 = vmatmul.mubr.msk.f32.vlgmr.msra.gmra.mrb[14].mxu1 %vm1286_vm6, %v1275_v0  ;;  %7057 = vmatpush3.msk.msra.mxu0 %vm1290_vm5, %v1749_v50 }
 0x389   : > { %v7460_v2 = vpop.eup %7459  ;;  %7052 = vmatpush3.msk.msra.mxu1 %vm1290_vm5, %v1672_v24  ;;  %7053 = vmatprep.mubr.msk.f32.mxu1 %vm7580_vm2, %v7578_v10  ;;  %v1281_v3 = vmul.f32 %v7458_v1, %v7857_v9  ;;  %v2346_v9 = vpop.permute.xlu1 %2345 }
 0x38a   : > { %7058 = vmatprep.mubr.msk.f32.mxu0 %vm7580_vm2, %v7578_v10  ;;  %7061 = vmatprep.subr.mxu1 %v7578_v10  ;;  %v1279_v5 = vmul.f32 %v7460_v2, %v7859_v11  ;;  %v2261_v6 = vpop.permute.xlu0 %2260 }
 0x38b   : > { %7059 = vmatmul.mubr.msk.f32.vlgmr.msra.gmra.mrb[12].mxu0 %vm1286_vm6, %v1281_v3  ;;  %7066 = vmatprep.subr.mxu0 %v7578_v10 }
 0x38c   : > { %7054 = vmatmul.mubr.msk.f32.vlgmr.msra.gmra.mrb[16].mxu1 %vm1286_vm6, %v1279_v5  ;;  %7068 = vmatprep.mubr.msk.f32.mxu0 %vm7580_vm2, %v7578_v10 }
 0x38d   : > { %v7462_v7 = vpop.eup %7461  ;;  %7062 = vmatpush3.msk.msra.mxu1 %vm1290_vm5, %v7913_v26  ;;  %7063 = vmatprep.mubr.msk.f32.mxu1 %vm7580_vm2, %v7578_v10  ;;  %v2344_v13 = vpop.permute.xlu1 %2343 }
 0x38e   : > { %v1283_v8 = vmul.f32 %v7462_v7, %v7865_v15  ;;  %7071 = vmatprep.subr.mxu1 %v7578_v10  ;;  %v2259_v11 = vpop.permute.xlu0 %2258 }
 0x38f   : > { %7067 = vmatpush3.xpose.msk.msra.mxu0 %vm531_vm3, %v7917_v29 }
 0x390   : > { %7064 = vmatmul.mubr.msk.f32.vlgmr.msra.gmra.mrb[18].mxu1 %vm1286_vm6, %v1283_v8  ;;  %7076 = vmatprep.subr.mxu0 %v7578_v10 }
 0x391   : > { %7073 = vmatprep.mubr.msk.f32.mxu1 %vm7580_vm2, %v7578_v10  ;;  %v2516_v15 = vpop.permute.xlu1 %2515 }
 0x392   : > { %7069 = vmatmul.mubr.msk.f32.vlgmr.msra.gmra.mrb[14].mxu0 %vm531_vm3, %v7921_v31  ;;  %v2431_v14 = vpop.permute.xlu0 %2430 }
 0x393   : > { %7077 = vmatpush3.xpose.msk.msra.mxu0 %vm531_vm3, %v7925_v35  ;;  %7078 = vmatprep.mubr.msk.f32.mxu0 %vm7580_vm2, %v7578_v10 }
 0x394   : > { %7072 = vmatpush3.xpose.msk.msra.mxu1 %vm531_vm3, %v7915_v27  ;;  %7086 = vmatprep.subr.mxu0 %v7578_v10 }
 0x395   : > { %7081 = vmatprep.subr.mxu1 %v7578_v10  ;;  %v2514_v57 = vpop.permute.xlu1 %2513 }
 0x396   : > { %7079 = vmatmul.mubr.msk.f32.vlgmr.msra.gmra.mrb[16].mxu0 %vm531_vm3, %v2089_v63  ;;  %v2429_v16 = vpop.permute.xlu0 %2428 }
 0x397   : > { %7074 = vmatmul.mubr.msk.f32.vlgmr.msra.gmra.mrb[20].mxu1 %vm531_vm3, %v7919_v30  ;;  %7087 = vmatpush3.xpose.msk.msra.mxu0 %vm531_vm3, %v2261_v6 }
 0x398   : > { %7082 = vmatpush3.xpose.msk.msra.mxu1 %vm531_vm3, %v7923_v55  ;;  %7083 = vmatprep.mubr.msk.f32.mxu1 %vm7580_vm2, %v7578_v10 }
 0x399   : > { %7088 = vmatprep.mubr.msk.f32.mxu0 %vm7580_vm2, %v7578_v10  ;;  %7091 = vmatprep.subr.mxu1 %v7578_v10 }
 0x39a   : > { %7089 = vmatmul.mubr.msk.f32.vlgmr.msra.gmra.mrb[18].mxu0 %vm531_vm3, %v2259_v11  ;;  %7096 = vmatprep.subr.mxu0 %v7578_v10 }
 0x39b   : > { %7084 = vmatmul.mubr.msk.f32.vlgmr.msra.gmra.mrb[22].mxu1 %vm531_vm3, %v2174_v4  ;;  %7097 = vmatpush3.xpose.msk.msra.mxu0 %vm531_vm3, %v2431_v14 }
 0x39c   : > { %7092 = vmatpush3.xpose.msk.msra.mxu1 %vm531_vm3, %v2346_v9  ;;  %7093 = vmatprep.mubr.msk.f32.mxu1 %vm7580_vm2, %v7578_v10 }
 0x39d   : > { %7098 = vmatprep.mubr.msk.f32.mxu0 %vm7580_vm2, %v7578_v10  ;;  %7101 = vmatprep.subr.mxu1 %v7578_v10 }
 0x39e   : > { %7099 = vmatmul.mubr.msk.f32.vlgmr.msra.gmra.mrb[20].mxu0 %vm531_vm3, %v2429_v16  ;;  %7106 = vmatprep.subr.mxu0 %v7578_v10 }
 0x39f   : > { %7094 = vmatmul.mubr.msk.f32.vlgmr.msra.gmra.mrb[24].mxu1 %vm531_vm3, %v2344_v13  ;;  %7108 = vmatprep.mubr.msk.f32.mxu0 %vm7580_vm2, %v7578_v10 }
 0x3a0   : > { %7102 = vmatpush3.xpose.msk.msra.mxu1 %vm531_vm3, %v2516_v15  ;;  %7103 = vmatprep.mubr.msk.f32.mxu1 %vm7580_vm2, %v7578_v10 }
 0x3a1   : > { %7111 = vmatprep.subr.mxu1 %v7578_v10 }
 0x3a3   : > { %7104 = vmatmul.mubr.msk.f32.vlgmr.msra.gmra.mrb[26].mxu1 %vm531_vm3, %v2514_v57 }
 0x3a4   : > { %7113 = vmatprep.mubr.msk.f32.mxu1 %vm7580_vm2, %v7578_v10 }
 0x452   : > { %v1359_v23 = vpop.f32.mrb[6].mxu0 }
 0x453   : > { %1903 = vst.msk [vmem:[#allocation3] sm:$0x3] %vm1902_vm7, %v1359_v23  ;;  %v7030_v24 = vpop.f32.mrb[7].mxu0 }
 0x456   : > { %v1513_v25 = vpop.f32.mrb[8].mxu0 }
 0x457   : > { %v1436_v26 = vpop.f32.mrb[12].mxu1  ;;  %1905 = vst.msk [vmem:[#allocation3 + $0x4] sm:$0x3] %vm1902_vm7, %v1513_v25  ;;  %v7040_v50 = vpop.f32.mrb[9].mxu0 }
 0x458   : > { %1904 = vst.msk [vmem:[#allocation3 + $0x2] sm:$0x3] %vm1902_vm7, %v1436_v26  ;;  %v7035_v27 = vpop.f32.mrb[13].mxu1 }
 0x45a   : > { %v1667_v29 = vpop.f32.mrb[10].mxu0 }
 0x45b   : > { %v1590_v30 = vpop.f32.mrb[14].mxu1  ;;  %1907 = vst.msk [vmem:[#allocation3 + $0x8] sm:$0x3] %vm1902_vm7, %v1667_v29  ;;  %v7050_v31 = vpop.f32.mrb[11].mxu0 }
 0x45c   : > { %1906 = vst.msk [vmem:[#allocation3 + $0x6] sm:$0x3] %vm1902_vm7, %v1590_v30  ;;  %v7045_v55 = vpop.f32.mrb[15].mxu1 }
 0x45e   : > { %v1821_v34 = vpop.f32.mrb[12].mxu0 }
 0x45f   : > { %v1744_v35 = vpop.f32.mrb[16].mxu1  ;;  %1909 = vst.msk [vmem:[#allocation3 + $0xc] sm:$0x3] %vm1902_vm7, %v1821_v34  ;;  %v7060_v38 = vpop.f32.mrb[13].mxu0 }
 0x460   : > { %1908 = vst.msk [vmem:[#allocation3 + $0xa] sm:$0x3] %vm1902_vm7, %v1744_v35  ;;  %v7055_v42 = vpop.f32.mrb[17].mxu1 }
 0x463   : > { %v1898_v43 = vpop.f32.mrb[18].mxu1 }
 0x464   : > { %1910 = vst.msk [vmem:[#allocation3 + $0xe] sm:$0x3] %vm1902_vm7, %v1898_v43  ;;  %v7065_v44 = vpop.f32.mrb[19].mxu1 }
 0x465   : > { %v1992_v45 = vpop.f32.mrb[14].mxu0 }
 0x466   : > { %v7070_v47 = vpop.f32.mrb[15].mxu0  ;;  %v2591_v48 = vsel %vm1195_vm4, %v1992_v45, -inf }
 0x467   : > { %2592 = vmax.xlane.f32.xlu0 %v2591_v48 }
 0x469   : > { %v2162_v49 = vpop.f32.mrb[16].mxu0 }
 0x46a   : > { %v2077_v52 = vpop.f32.mrb[20].mxu1  ;;  %v7080_v56 = vpop.f32.mrb[17].mxu0  ;;  %v2597_v58 = vsel %vm1195_vm4, %v2162_v49, -inf }
 0x46b   : > { %v7075_v59 = vpop.f32.mrb[21].mxu1  ;;  %2598 = vmax.xlane.f32.xlu0 %v2597_v58  ;;  %v2594_v60 = vsel %vm1195_vm4, %v2077_v52, -inf }
 0x46c   : > { %2595 = vmax.xlane.f32.xlu1 %v2594_v60 }
 0x46d   : > { %v2332_v53 = vpop.f32.mrb[18].mxu0 }
 0x46e   : > { %v2247_v61 = vpop.f32.mrb[22].mxu1  ;;  %v7090_v62 = vpop.f32.mrb[19].mxu0  ;;  %v2603_v63 = vsel %vm1195_vm4, %v2332_v53, -inf }
 0x46f   : > { %v7085_v0 = vpop.f32.mrb[23].mxu1  ;;  %v2600_v1 = vsel %vm1195_vm4, %v2247_v61, -inf }
 0x470   : > { %2604 = vmax.xlane.f32.xlu1 %v2603_v63  ;;  %2601 = vmax.xlane.f32.xlu0 %v2600_v1 }
 0x471   : > { %v2502_v2 = vpop.f32.mrb[20].mxu0 }
 0x472   : > { %v2417_v3 = vpop.f32.mrb[24].mxu1  ;;  %v7100_v4 = vpop.f32.mrb[21].mxu0  ;;  %v2609_v5 = vsel %vm1195_vm4, %v2502_v2, -inf }
 0x473   : > { %v7095_v6 = vpop.f32.mrb[25].mxu1  ;;  %v2606_v7 = vsel %vm1195_vm4, %v2417_v3, -inf }
 0x474   : > { %2610 = vmax.xlane.f32.xlu1 %v2609_v5  ;;  %2607 = vmax.xlane.f32.xlu0 %v2606_v7 }
 0x476   : > { %v2587_v8 = vpop.f32.mrb[26].mxu1 }
 0x477   : > { %v7105_v9 = vpop.f32.mrb[27].mxu1  ;;  %v2612_v11 = vsel %vm1195_vm4, %v2587_v8, -inf }
 0x478   : > { %2613 = vmax.xlane.f32.xlu0 %v2612_v11 }
 0x485   : > { %2679 = vrot.lane.b32.xlu1 %v7700_v28, %s7585_s14 }
 0x489   : > { %2833 = vrot.lane.b32.xlu1 %v7705_v32, %s7585_s14 }
 0x48d   : > { %2910 = vrot.lane.b32.xlu1 %v7714_v36, %s7585_s14 }
 0x48e   : > { %2756 = vrot.lane.b32.xlu0 %v7708_v33, %s7585_s14 }
 0x491   : > { %3064 = vrot.lane.b32.xlu1 %v7722_v39, %s7585_s14 }
 0x492   : > { %2987 = vrot.lane.b32.xlu0 %v7717_v37, %s7585_s14 }
 0x495   : > { %3218 = vrot.lane.b32.xlu1 %v7730_v41, %s7585_s14 }
 0x496   : > { %3141 = vrot.lane.b32.xlu0 %v7725_v40, %s7585_s14 }
 0x499   : > { %3416 = vrot.lane.b32.xlu1 %v7708_v33, %s7586_s16 }
 0x49a   : > { %3338 = vrot.lane.b32.xlu0 %v7700_v28, %s7586_s16 }
 0x49d   : > { %3414 = vrot.lane.b32.xlu1 %v7819_v21, %s7587_s17 }
 0x49e   : > { %3336 = vrot.lane.b32.xlu0 %v7823_v22, %s7587_s17 }
 0x4a1   : > { %3572 = vrot.lane.b32.xlu1 %v7714_v36, %s7586_s16 }
 0x4a2   : > { %3494 = vrot.lane.b32.xlu0 %v7705_v32, %s7586_s16 }
 0x4f4   : > { %v2593_v13 = vpop.xlane.xlu0 %2592 }
 0x4f5   : > { %v2615_v14 = vsub.f32 %v1992_v45, %v2593_v13 }
 0x4f7   : > { %v2623_v15 = vmul.f32 1.442695, %v2615_v14 }
 0x4f8   : > { %v2599_v16 = vpop.xlane.xlu0 %2598 }
 0x4f9   : > { %7463 = vpow2.f32 %v2623_v15  ;;  %v2617_v57 = vsub.f32 %v2162_v49, %v2599_v16  ;;  %v2596_v23 = vpop.xlane.xlu1 %2595 }
 0x4fa   : > { %v2616_v24 = vsub.f32 %v2077_v52, %v2596_v23 }
 0x4fb   : > { %v2627_v25 = vmul.f32 1.442695, %v2617_v57 }
 0x4fc   : > { %v2625_v26 = vmul.f32 1.442695, %v2616_v24 }
 0x4fd   : > { %7465 = vpow2.f32 %v2627_v25  ;;  %v2605_v50 = vpop.xlane.xlu1 %2604  ;;  %v2602_v27 = vpop.xlane.xlu0 %2601 }
 0x4fe   : > { %7467 = vpow2.f32 %v2625_v26  ;;  %v2619_v29 = vsub.f32 %v2332_v53, %v2605_v50  ;;  %v2618_v30 = vsub.f32 %v2247_v61, %v2602_v27 }
 0x500   : > { %v2631_v31 = vmul.f32 1.442695, %v2619_v29  ;;  %v2629_v55 = vmul.f32 1.442695, %v2618_v30 }
 0x501   : > { %v2611_v34 = vpop.xlane.xlu1 %2610  ;;  %v2608_v35 = vpop.xlane.xlu0 %2607 }
 0x502   : > { %7469 = vpow2.f32 %v2631_v31  ;;  %v2621_v38 = vsub.f32 %v2502_v2, %v2611_v34  ;;  %v2620_v42 = vsub.f32 %v2417_v3, %v2608_v35 }
 0x503   : > { %v8054_v43 = vpop.eup %7463  ;;  %7471 = vpow2.f32 %v2629_v55 }
 0x504   : > { %v2635_v44 = vmul.f32 1.442695, %v2621_v38  ;;  %v2633_v45 = vmul.f32 1.442695, %v2620_v42  ;;  %v2639_v47 = vsel %vm1195_vm4, %v8054_v43, 0.0 }
 0x505   : > { %v2680_v48 = vpop.permute.xlu1 %2679  ;;  %v2614_v49 = vpop.xlane.xlu0 %2613  ;;  %2640 = vadd.xlane.f32.xlu1 %v2639_v47 }
 0x506   : > { %7473 = vpow2.f32 %v2635_v44  ;;  %v2622_v52 = vsub.f32 %v2587_v8, %v2614_v49  ;;  %7107 = vmatpush3.msk.msra.mxu0 %vm1290_vm5, %v2680_v48 }
 0x507   : > { %v8059_v56 = vpop.eup %7465  ;;  %7475 = vpow2.f32 %v2633_v45  ;;  %7116 = vmatprep.subr.mxu0 %v7578_v10 }
 0x508   : > { %v8062_v58 = vpop.eup %7467  ;;  %v2637_v59 = vmul.f32 1.442695, %v2622_v52  ;;  %v2645_v60 = vsel %vm1195_vm4, %v8059_v56, 0.0 }
 0x509   : > { %v2757_v53 = vpop.permute.xlu0 %2756  ;;  %2646 = vadd.xlane.f32.xlu1 %v2645_v60  ;;  %v2642_v61 = vsel %vm1195_vm4, %v8062_v58, 0.0  ;;  %v2834_v8 = vpop.permute.xlu1 %2833 }
 0x50a   : > { %7477 = vpow2.f32 %v2637_v59  ;;  %2643 = vadd.xlane.f32.xlu0 %v2642_v61  ;;  %7112 = vmatpush3.msk.msra.mxu1 %vm1290_vm5, %v2757_v53 }
 0x50b   : > { %7121 = vmatprep.subr.mxu1 %v7578_v10 }
 0x50c   : > { %v8070_v62 = vpop.eup %7469 }
 0x50d   : > { %v8072_v63 = vpop.eup %7471  ;;  %v2651_v0 = vsel %vm1195_vm4, %v8070_v62, 0.0  ;;  %v2911_v9 = vpop.permute.xlu1 %2910 }
 0x50e   : > { %2652 = vadd.xlane.f32.xlu1 %v2651_v0  ;;  %v2648_v1 = vsel %vm1195_vm4, %v8072_v63, 0.0  ;;  %v2988_v13 = vpop.permute.xlu0 %2987 }
 0x50f   : > { %2649 = vadd.xlane.f32.xlu0 %v2648_v1 }
 0x510   : > { %v8078_v2 = vpop.eup %7473 }
 0x511   : > { %v8080_v3 = vpop.eup %7475  ;;  %v2657_v4 = vsel %vm1195_vm4, %v8078_v2, 0.0  ;;  %v3065_v11 = vpop.permute.xlu1 %3064 }
 0x512   : > { %2658 = vadd.xlane.f32.xlu1 %v2657_v4  ;;  %v2654_v5 = vsel %vm1195_vm4, %v8080_v3, 0.0  ;;  %v3142_v15 = vpop.permute.xlu0 %3141 }
 0x513   : > { %2655 = vadd.xlane.f32.xlu0 %v2654_v5 }
 0x514   : > { %v8086_v6 = vpop.eup %7477 }
 0x515   : > { %v2660_v7 = vsel %vm1195_vm4, %v8086_v6, 0.0  ;;  %v8126_v14 = vpop.permute.xlu1 %3218 }
 0x516   : > { %v8130_v57 = vpop.permute.xlu0 %3338 }
 0x517   : > { %2661 = vadd.xlane.f32.xlu0 %v2660_v7 }
 0x519   : > { %v8128_v16 = vpop.permute.xlu1 %3416 }
 0x51a   : > { %v8134_v24 = vpop.permute.xlu0 %3336 }
 0x51d   : > { %v8132_v23 = vpop.permute.xlu1 %3414 }
 0x51e   : > { %v8138_v26 = vpop.permute.xlu0 %3494 }
 0x521   : > { %v8136_v25 = vpop.permute.xlu1 %3572 }
 0x523   : > { %3570 = vrot.lane.b32.xlu1 %v7871_v17, %s7587_s17 }
 0x527   : > { %3728 = vrot.lane.b32.xlu1 %v7722_v39, %s7586_s16 }
 0x52b   : > { %3726 = vrot.lane.b32.xlu1 %v7879_v18, %s7587_s17 }
 0x52d   : > { %3492 = vrot.lane.b32.xlu0 %v7885_v19, %s7587_s17 }
 0x52f   : > { %3884 = vrot.lane.b32.xlu1 %v7730_v41, %s7586_s16 }
 0x531   : > { %3650 = vrot.lane.b32.xlu0 %v7717_v37, %s7586_s16 }
 0x533   : > { %3882 = vrot.lane.b32.xlu1 %v7895_v51, %s7587_s17 }
 0x535   : > { %3648 = vrot.lane.b32.xlu0 %v7901_v46, %s7587_s17 }
 0x537   : > { %4048 = vrot.lane.b32.xlu1 %v7700_v28, %s7588_s19 }
 0x539   : > { %3806 = vrot.lane.b32.xlu0 %v7725_v40, %s7586_s16 }
 0x53b   : > { %4202 = vrot.lane.b32.xlu1 %v7705_v32, %s7588_s19 }
 0x53d   : > { %3804 = vrot.lane.b32.xlu0 %v7909_v54, %s7587_s17 }
 0x53f   : > { %4279 = vrot.lane.b32.xlu1 %v7714_v36, %s7588_s19 }
 0x541   : > { %4125 = vrot.lane.b32.xlu0 %v7708_v33, %s7588_s19 }
 0x543   : > { %4433 = vrot.lane.b32.xlu1 %v7722_v39, %s7588_s19 }
 0x545   : > { %4356 = vrot.lane.b32.xlu0 %v7717_v37, %s7588_s19 }
 0x547   : > { %4587 = vrot.lane.b32.xlu1 %v7730_v41, %s7588_s19 }
 0x549   : > { %4510 = vrot.lane.b32.xlu0 %v7725_v40, %s7588_s19 }
 0x54b   : > { %4785 = vrot.lane.b32.xlu1 %v7708_v33, %s7589_s20 }
 0x54d   : > { %4707 = vrot.lane.b32.xlu0 %v7700_v28, %s7589_s20 }
 0x54f   : > { %4783 = vrot.lane.b32.xlu1 %v7819_v21, %s7590_s22 }
 0x551   : > { %4705 = vrot.lane.b32.xlu0 %v7823_v22, %s7590_s22 }
 0x592   : > { %v2641_v21 = vpop.xlane.xlu1 %2640 }
 0x593   : > { %7479 = vrcp.f32 %v2641_v21 }
 0x596   : > { %v2647_v22 = vpop.xlane.xlu1 %2646 }
 0x597   : > { %7481 = vrcp.f32 %v2647_v22  ;;  %v2644_v50 = vpop.xlane.xlu0 %2643 }
 0x598   : > { %7483 = vrcp.f32 %v2644_v50 }
 0x59b   : > { %v2653_v27 = vpop.xlane.xlu1 %2652 }
 0x59c   : > { %7485 = vrcp.f32 %v2653_v27  ;;  %v2650_v29 = vpop.xlane.xlu0 %2649 }
 0x59d   : > { %v7480_v30 = vpop.eup %7479  ;;  %7487 = vrcp.f32 %v2650_v29 }
 0x59e   : > { %v2664_v31 = vmul.f32 %v7480_v30, %v8054_v43 }
 0x59f   : > { %v2659_v55 = vpop.xlane.xlu1 %2658 }
 0x5a0   : > { %7489 = vrcp.f32 %v2659_v55  ;;  %v2656_v34 = vpop.xlane.xlu0 %2655  ;;  %7109 = vmatmul.mubr.msk.f32.vlgmr.msra.gmra.mrb[22].mxu0 %vm1286_vm6, %v2664_v31 }
 0x5a1   : > { %v7482_v35 = vpop.eup %7481  ;;  %7491 = vrcp.f32 %v2656_v34  ;;  %7117 = vmatpush3.msk.msra.mxu0 %vm1290_vm5, %v2834_v8  ;;  %7118 = vmatprep.mubr.msk.f32.mxu0 %vm7580_vm2, %v7578_v10 }
 0x5a2   : > { %v7484_v38 = vpop.eup %7483  ;;  %7126 = vmatprep.subr.mxu0 %v7578_v10  ;;  %v2668_v42 = vmul.f32 %v7482_v35, %v8059_v56 }
 0x5a3   : > { %v8147_v44 = vpop.permute.xlu1 %3570  ;;  %v2666_v43 = vmul.f32 %v7484_v38, %v8062_v58 }
 0x5a4   : > { %v2662_v45 = vpop.xlane.xlu0 %2661  ;;  %7119 = vmatmul.mubr.msk.f32.vlgmr.msra.gmra.mrb[24].mxu0 %vm1286_vm6, %v2668_v42 }
 0x5a5   : > { %7493 = vrcp.f32 %v2662_v45  ;;  %7114 = vmatmul.mubr.msk.f32.vlgmr.msra.gmra.mrb[28].mxu1 %vm1286_vm6, %v2666_v43  ;;  %7127 = vmatpush3.msk.msra.mxu0 %vm1290_vm5, %v2988_v13 }
 0x5a6   : > { %v7486_v47 = vpop.eup %7485  ;;  %7122 = vmatpush3.msk.msra.mxu1 %vm1290_vm5, %v2911_v9  ;;  %7123 = vmatprep.mubr.msk.f32.mxu1 %vm7580_vm2, %v7578_v10 }
 0x5a7   : > { %v7488_v48 = vpop.eup %7487  ;;  %7128 = vmatprep.mubr.msk.f32.mxu0 %vm7580_vm2, %v7578_v10  ;;  %7131 = vmatprep.subr.mxu1 %v7578_v10  ;;  %v2672_v49 = vmul.f32 %v7486_v47, %v8070_v62  ;;  %v3729_v52 = vpop.permute.xlu1 %3728 }
 0x5a8   : > { %v3493_v56 = vpop.permute.xlu0 %3492  ;;  %7136 = vmatprep.subr.mxu0 %v7578_v10  ;;  %v2670_v58 = vmul.f32 %v7488_v48, %v8072_v63 }
 0x5a9   : > { %7129 = vmatmul.mubr.msk.f32.vlgmr.msra.gmra.mrb[26].mxu0 %vm1286_vm6, %v2672_v49 }
 0x5aa   : > { %v7490_v59 = vpop.eup %7489  ;;  %7124 = vmatmul.mubr.msk.f32.vlgmr.msra.gmra.mrb[30].mxu1 %vm1286_vm6, %v2670_v58  ;;  %7137 = vmatpush3.msk.msra.mxu0 %vm1290_vm5, %v3142_v15 }
 0x5ab   : > { %v7492_v60 = vpop.eup %7491  ;;  %7132 = vmatpush3.msk.msra.mxu1 %vm1290_vm5, %v3065_v11  ;;  %7133 = vmatprep.mubr.msk.f32.mxu1 %vm7580_vm2, %v7578_v10  ;;  %v2676_v53 = vmul.f32 %v7490_v59, %v8078_v2  ;;  %v3727_v63 = vpop.permute.xlu1 %3726 }
 0x5ac   : > { %7138 = vmatprep.mubr.msk.f32.mxu0 %vm7580_vm2, %v7578_v10  ;;  %7141 = vmatprep.subr.mxu1 %v7578_v10  ;;  %v2674_v61 = vmul.f32 %v7492_v60, %v8080_v3  ;;  %v3651_v62 = vpop.permute.xlu0 %3650 }
 0x5ad   : > { %7139 = vmatmul.mubr.msk.f32.vlgmr.msra.gmra.mrb[28].mxu0 %vm1286_vm6, %v2676_v53  ;;  %7146 = vmatprep.subr.mxu0 %v7578_v10 }
 0x5ae   : > { %7134 = vmatmul.mubr.msk.f32.vlgmr.msra.gmra.mrb[32].mxu1 %vm1286_vm6, %v2674_v61  ;;  %7148 = vmatprep.mubr.msk.f32.mxu0 %vm7580_vm2, %v7578_v10 }
 0x5af   : > { %v7494_v0 = vpop.eup %7493  ;;  %7142 = vmatpush3.msk.msra.mxu1 %vm1290_vm5, %v8126_v14  ;;  %7143 = vmatprep.mubr.msk.f32.mxu1 %vm7580_vm2, %v7578_v10  ;;  %v3885_v3 = vpop.permute.xlu1 %3884 }
 0x5b0   : > { %v2678_v1 = vmul.f32 %v7494_v0, %v8086_v6  ;;  %7151 = vmatprep.subr.mxu1 %v7578_v10  ;;  %v3649_v2 = vpop.permute.xlu0 %3648 }
 0x5b1   : > { %7147 = vmatpush3.xpose.msk.msra.mxu0 %vm531_vm3, %v8130_v57 }
 0x5b2   : > { %7144 = vmatmul.mubr.msk.f32.vlgmr.msra.gmra.mrb[34].mxu1 %vm1286_vm6, %v2678_v1  ;;  %7156 = vmatprep.subr.mxu0 %v7578_v10 }
 0x5b3   : > { %7153 = vmatprep.mubr.msk.f32.mxu1 %vm7580_vm2, %v7578_v10  ;;  %v3883_v5 = vpop.permute.xlu1 %3882 }
 0x5b4   : > { %7149 = vmatmul.mubr.msk.f32.vlgmr.msra.gmra.mrb[30].mxu0 %vm531_vm3, %v8134_v24  ;;  %v3807_v4 = vpop.permute.xlu0 %3806 }
 0x5b5   : > { %7157 = vmatpush3.xpose.msk.msra.mxu0 %vm531_vm3, %v8138_v26  ;;  %7158 = vmatprep.mubr.msk.f32.mxu0 %vm7580_vm2, %v7578_v10 }
 0x5b6   : > { %7152 = vmatpush3.xpose.msk.msra.mxu1 %vm531_vm3, %v8128_v16  ;;  %7166 = vmatprep.subr.mxu0 %v7578_v10 }
 0x5b7   : > { %7161 = vmatprep.subr.mxu1 %v7578_v10  ;;  %v4049_v7 = vpop.permute.xlu1 %4048 }
 0x5b8   : > { %7159 = vmatmul.mubr.msk.f32.vlgmr.msra.gmra.mrb[32].mxu0 %vm531_vm3, %v3493_v56  ;;  %v3805_v6 = vpop.permute.xlu0 %3804 }
 0x5b9   : > { %7154 = vmatmul.mubr.msk.f32.vlgmr.msra.gmra.mrb[36].mxu1 %vm531_vm3, %v8132_v23  ;;  %7167 = vmatpush3.xpose.msk.msra.mxu0 %vm531_vm3, %v3651_v62 }
 0x5ba   : > { %7162 = vmatpush3.xpose.msk.msra.mxu1 %vm531_vm3, %v8136_v25  ;;  %7163 = vmatprep.mubr.msk.f32.mxu1 %vm7580_vm2, %v7578_v10 }
 0x5bb   : > { %7168 = vmatprep.mubr.msk.f32.mxu0 %vm7580_vm2, %v7578_v10  ;;  %7171 = vmatprep.subr.mxu1 %v7578_v10 }
 0x5bc   : > { %7169 = vmatmul.mubr.msk.f32.vlgmr.msra.gmra.mrb[34].mxu0 %vm531_vm3, %v3649_v2  ;;  %7176 = vmatprep.subr.mxu0 %v7578_v10  ;;  %v4126_v8 = vpop.permute.xlu0 %4125  ;;  %v8272_v2 = vpop.permute.xlu1 %4202 }
 0x5bd   : > { %7164 = vmatmul.mubr.msk.f32.vlgmr.msra.gmra.mrb[38].mxu1 %vm531_vm3, %v8147_v44  ;;  %7177 = vmatpush3.xpose.msk.msra.mxu0 %vm531_vm3, %v3807_v4 }
 0x5be   : > { %7172 = vmatpush3.xpose.msk.msra.mxu1 %vm531_vm3, %v3729_v52  ;;  %7173 = vmatprep.mubr.msk.f32.mxu1 %vm7580_vm2, %v7578_v10 }
 0x5bf   : > { %7178 = vmatprep.mubr.msk.f32.mxu0 %vm7580_vm2, %v7578_v10  ;;  %7181 = vmatprep.subr.mxu1 %v7578_v10 }
 0x5c0   : > { %7179 = vmatmul.mubr.msk.f32.vlgmr.msra.gmra.mrb[36].mxu0 %vm531_vm3, %v3805_v6  ;;  %7186 = vmatprep.subr.mxu0 %v7578_v10  ;;  %v8276_v4 = vpop.permute.xlu0 %4356 }
 0x5c1   : > { %7174 = vmatmul.mubr.msk.f32.vlgmr.msra.gmra.mrb[40].mxu1 %vm531_vm3, %v3727_v63  ;;  %7187 = vmatpush3.msk.msra.mxu0 %vm1290_vm5, %v4049_v7 }
 0x5c2   : > { %7182 = vmatpush3.xpose.msk.msra.mxu1 %vm531_vm3, %v3885_v3  ;;  %7183 = vmatprep.mubr.msk.f32.mxu1 %vm7580_vm2, %v7578_v10  ;;  %v8274_v3 = vpop.permute.xlu1 %4279 }
 0x5c3   : > { %7191 = vmatprep.subr.mxu1 %v7578_v10  ;;  %7188 = vmatprep.mubr.msk.f32.mxu0 %vm7580_vm2, %v7578_v10 }
 0x5c4   : > { %7196 = vmatprep.subr.mxu0 %v7578_v10  ;;  %v8280_v6 = vpop.permute.xlu0 %4510 }
 0x5c5   : > { %7184 = vmatmul.mubr.msk.f32.vlgmr.msra.gmra.mrb[42].mxu1 %vm531_vm3, %v3883_v5 }
 0x5c6   : > { %7192 = vmatpush3.msk.msra.mxu1 %vm1290_vm5, %v4126_v8  ;;  %7193 = vmatprep.mubr.msk.f32.mxu1 %vm7580_vm2, %v7578_v10  ;;  %v8278_v5 = vpop.permute.xlu1 %4433 }
 0x5c7   : > { %7201 = vmatprep.subr.mxu1 %v7578_v10 }
 0x5c8   : > { %v8284_v8 = vpop.permute.xlu0 %4707 }
 0x5ca   : > { %v8282_v7 = vpop.permute.xlu1 %4587 }
 0x673   : > { %v8238_v9 = vpop.f32.mrb[22].mxu0 }
 0x674   : > { %v7110_v11 = vpop.f32.mrb[23].mxu0 }
 0x675   : > { %v8286_v11 = vpop.permute.xlu1 %4785 }
 0x677   : > { %v8240_v13 = vpop.f32.mrb[24].mxu0 }
 0x678   : > { %v8242_v14 = vpop.f32.mrb[28].mxu1  ;;  %v7120_v15 = vpop.f32.mrb[25].mxu0 }
 0x679   : > { %v7115_v16 = vpop.f32.mrb[29].mxu1  ;;  %v8288_v15 = vpop.permute.xlu0 %4705 }
 0x67c   : > { %v8244_v57 = vpop.f32.mrb[26].mxu0 }
 0x67d   : > { %v8246_v23 = vpop.f32.mrb[30].mxu1  ;;  %v7130_v24 = vpop.f32.mrb[27].mxu0 }
 0x67e   : > { %v7125_v25 = vpop.f32.mrb[31].mxu1  ;;  %v8290_v24 = vpop.permute.xlu1 %4783 }
 0x680   : > { %v8248_v21 = vpop.f32.mrb[28].mxu0 }
 0x681   : > { %v8250_v26 = vpop.f32.mrb[32].mxu1  ;;  %v7140_v22 = vpop.f32.mrb[29].mxu0 }
 0x682   : > { %v7135_v50 = vpop.f32.mrb[33].mxu1 }
 0x685   : > { %v8252_v27 = vpop.f32.mrb[34].mxu1 }
 0x686   : > { %v7145_v29 = vpop.f32.mrb[35].mxu1 }
 0x687   : > { %v3410_v30 = vpop.f32.mrb[30].mxu0 }
 0x688   : > { %v7150_v31 = vpop.f32.mrb[31].mxu0  ;;  %v3960_v55 = vsel %vm1195_vm4, %v3410_v30, -inf }
 0x689   : > { %3961 = vmax.xlane.f32.xlu0 %v3960_v55 }
 0x68b   : > { %v3566_v34 = vpop.f32.mrb[32].mxu0 }
 0x68c   : > { %v3488_v35 = vpop.f32.mrb[36].mxu1  ;;  %v7160_v38 = vpop.f32.mrb[33].mxu0  ;;  %v3966_v42 = vsel %vm1195_vm4, %v3566_v34, -inf }
 0x68d   : > { %v7155_v44 = vpop.f32.mrb[37].mxu1  ;;  %3967 = vmax.xlane.f32.xlu0 %v3966_v42  ;;  %v3963_v43 = vsel %vm1195_vm4, %v3488_v35, -inf }
 0x68e   : > { %3964 = vmax.xlane.f32.xlu1 %v3963_v43 }
 0x68f   : > { %v3722_v45 = vpop.f32.mrb[34].mxu0 }
 0x690   : > { %v3644_v47 = vpop.f32.mrb[38].mxu1  ;;  %v7170_v48 = vpop.f32.mrb[35].mxu0  ;;  %v3972_v49 = vsel %vm1195_vm4, %v3722_v45, -inf }
 0x691   : > { %v7165_v52 = vpop.f32.mrb[39].mxu1  ;;  %v3969_v56 = vsel %vm1195_vm4, %v3644_v47, -inf }
 0x692   : > { %3973 = vmax.xlane.f32.xlu1 %v3972_v49  ;;  %3970 = vmax.xlane.f32.xlu0 %v3969_v56 }
 0x693   : > { %v8259_v58 = vpop.f32.mrb[36].mxu0 }
 0x694   : > { %v3800_v59 = vpop.f32.mrb[40].mxu1  ;;  %v7180_v60 = vpop.f32.mrb[37].mxu0  ;;  %v3978_v53 = vsel %vm1195_vm4, %v8259_v58, -inf }
 0x695   : > { %v7175_v61 = vpop.f32.mrb[41].mxu1  ;;  %v3975_v62 = vsel %vm1195_vm4, %v3800_v59, -inf }
 0x696   : > { %3979 = vmax.xlane.f32.xlu1 %v3978_v53  ;;  %3976 = vmax.xlane.f32.xlu0 %v3975_v62 }
 0x698   : > { %v8264_v63 = vpop.f32.mrb[42].mxu1 }
 0x699   : > { %v7185_v0 = vpop.f32.mrb[43].mxu1  ;;  %v3981_v1 = vsel %vm1195_vm4, %v8264_v63, -inf }
 0x69a   : > { %3982 = vmax.xlane.f32.xlu0 %v3981_v1 }
 0x6a7   : > { %4941 = vrot.lane.b32.xlu1 %v7714_v36, %s7589_s20 }
 0x6b0   : > { %4863 = vrot.lane.b32.xlu0 %v7705_v32, %s7589_s20 }
 0x716   : > { %v3962_v16 = vpop.xlane.xlu0 %3961 }
 0x717   : > { %v3984_v25 = vsub.f32 %v3410_v30, %v3962_v16 }
 0x719   : > { %v3992_v22 = vmul.f32 1.442695, %v3984_v25 }
 0x71a   : > { %v3968_v50 = vpop.xlane.xlu0 %3967 }
 0x71b   : > { %7495 = vpow2.f32 %v3992_v22  ;;  %v3986_v29 = vsub.f32 %v3566_v34, %v3968_v50  ;;  %v3965_v31 = vpop.xlane.xlu1 %3964 }
 0x71c   : > { %v3985_v55 = vsub.f32 %v3488_v35, %v3965_v31 }
 0x71d   : > { %v3996_v38 = vmul.f32 1.442695, %v3986_v29 }
 0x71e   : > { %v3994_v42 = vmul.f32 1.442695, %v3985_v55 }
 0x71f   : > { %7497 = vpow2.f32 %v3996_v38  ;;  %v3974_v44 = vpop.xlane.xlu1 %3973  ;;  %v3971_v43 = vpop.xlane.xlu0 %3970 }
 0x720   : > { %7499 = vpow2.f32 %v3994_v42  ;;  %v3988_v48 = vsub.f32 %v3722_v45, %v3974_v44  ;;  %v3987_v49 = vsub.f32 %v3644_v47, %v3971_v43 }
 0x722   : > { %v4000_v52 = vmul.f32 1.442695, %v3988_v48  ;;  %v3998_v56 = vmul.f32 1.442695, %v3987_v49 }
 0x723   : > { %v3977_v60 = vpop.xlane.xlu0 %3976  ;;  %v3980_v50 = vpop.xlane.xlu1 %3979 }
 0x724   : > { %7501 = vpow2.f32 %v4000_v52  ;;  %v3989_v53 = vsub.f32 %v3800_v59, %v3977_v60  ;;  %v3990_v29 = vsub.f32 %v8259_v58, %v3980_v50 }
 0x725   : > { %v7496_v30 = vpop.eup %7495  ;;  %7503 = vpow2.f32 %v3998_v56 }
 0x726   : > { %v4002_v61 = vmul.f32 1.442695, %v3989_v53  ;;  %v4008_v34 = vsel %vm1195_vm4, %v7496_v30, 0.0  ;;  %v4004_v55 = vmul.f32 1.442695, %v3990_v29 }
 0x727   : > { %4009 = vadd.xlane.f32.xlu1 %v4008_v34  ;;  %v3983_v31 = vpop.xlane.xlu0 %3982  ;;  %v8337_v58 = vpop.permute.xlu1 %4941 }
 0x728   : > { %7505 = vpow2.f32 %v4002_v61  ;;  %v3991_v38 = vsub.f32 %v8264_v63, %v3983_v31 }
 0x729   : > { %v7498_v35 = vpop.eup %7497  ;;  %7507 = vpow2.f32 %v4004_v55 }
 0x72a   : > { %v7500_v62 = vpop.eup %7499  ;;  %v4014_v0 = vsel %vm1195_vm4, %v7498_v35, 0.0  ;;  %v4006_v42 = vmul.f32 1.442695, %v3991_v38 }
 0x72b   : > { %4015 = vadd.xlane.f32.xlu1 %v4014_v0  ;;  %v4011_v45 = vsel %vm1195_vm4, %v7500_v62, 0.0  ;;  %v8339_v63 = vpop.permute.xlu0 %4863 }
 0x72c   : > { %4012 = vadd.xlane.f32.xlu0 %v4011_v45  ;;  %7509 = vpow2.f32 %v4006_v42 }
 0x72e   : > { %v8295_v47 = vpop.eup %7501 }
 0x72f   : > { %v8297_v1 = vpop.eup %7503  ;;  %v4020_v59 = vsel %vm1195_vm4, %v8295_v47, 0.0 }
 0x730   : > { %4021 = vadd.xlane.f32.xlu1 %v4020_v59  ;;  %v4017_v16 = vsel %vm1195_vm4, %v8297_v1, 0.0 }
 0x731   : > { %4018 = vadd.xlane.f32.xlu0 %v4017_v16 }
 0x732   : > { %v8303_v25 = vpop.eup %7505 }
 0x733   : > { %v4023_v22 = vsel %vm1195_vm4, %v8303_v25, 0.0  ;;  %v8313_v44 = vpop.eup %7507 }
 0x734   : > { %v4026_v43 = vsel %vm1195_vm4, %v8313_v44, 0.0 }
 0x735   : > { %4024 = vadd.xlane.f32.xlu0 %v4023_v22 }
 0x741   : > { %4939 = vrot.lane.b32.xlu1 %v7871_v17, %s7590_s22  ;;  %v8317_v17 = vpop.eup %7509 }
 0x74b   : > { %4861 = vrot.lane.b32.xlu0 %v7885_v19, %s7590_s22  ;;  %v4029_v19 = vsel %vm1195_vm4, %v8317_v17, 0.0 }
 0x765   : > { %4027 = vadd.xlane.f32.xlu1 %v4026_v43 }
 0x76a   : > { %4030 = vadd.xlane.f32.xlu0 %v4029_v19 }
 0x776   : > { %5097 = vrot.lane.b32.xlu1 %v7722_v39, %s7589_s20 }
 0x77a   : > { %5095 = vrot.lane.b32.xlu1 %v7879_v18, %s7590_s22 }
 0x77e   : > { %5253 = vrot.lane.b32.xlu1 %v7730_v41, %s7589_s20 }
 0x780   : > { %5019 = vrot.lane.b32.xlu0 %v7717_v37, %s7589_s20 }
 0x782   : > { %5251 = vrot.lane.b32.xlu1 %v7895_v51, %s7590_s22 }
 0x784   : > { %5017 = vrot.lane.b32.xlu0 %v7901_v46, %s7590_s22 }
 0x788   : > { %5175 = vrot.lane.b32.xlu0 %v7725_v40, %s7589_s20 }
 0x78c   : > { %5173 = vrot.lane.b32.xlu0 %v7909_v54, %s7590_s22 }
 0x7b4   : > { %v4010_v18 = vpop.xlane.xlu1 %4009 }
 0x7b5   : > { %7511 = vrcp.f32 %v4010_v18 }
 0x7b8   : > { %v4016_v48 = vpop.xlane.xlu1 %4015 }
 0x7b9   : > { %7513 = vrcp.f32 %v4016_v48  ;;  %v4013_v49 = vpop.xlane.xlu0 %4012 }
 0x7ba   : > { %7515 = vrcp.f32 %v4013_v49 }
 0x7bd   : > { %v4022_v51 = vpop.xlane.xlu1 %4021 }
 0x7be   : > { %7517 = vrcp.f32 %v4022_v51  ;;  %v4019_v52 = vpop.xlane.xlu0 %4018 }
 0x7bf   : > { %v7512_v46 = vpop.eup %7511  ;;  %7519 = vrcp.f32 %v4019_v52 }
 0x7c0   : > { %v4033_v56 = vmul.f32 %v7512_v46, %v7496_v30 }
 0x7c2   : > { %v4025_v60 = vpop.xlane.xlu0 %4024  ;;  %7189 = vmatmul.mubr.msk.f32.vlgmr.msra.gmra.mrb[38].mxu0 %vm1286_vm6, %v4033_v56 }
 0x7c3   : > { %v7514_v54 = vpop.eup %7513  ;;  %7521 = vrcp.f32 %v4025_v60  ;;  %7197 = vmatpush3.msk.msra.mxu0 %vm1290_vm5, %v8272_v2  ;;  %7198 = vmatprep.mubr.msk.f32.mxu0 %vm7580_vm2, %v7578_v10 }
 0x7c4   : > { %v7516_v53 = vpop.eup %7515  ;;  %v4037_v61 = vmul.f32 %v7514_v54, %v7498_v35  ;;  %7206 = vmatprep.subr.mxu0 %v7578_v10 }
 0x7c5   : > { %v4035_v34 = vmul.f32 %v7516_v53, %v7500_v62 }
 0x7c6   : > { %7199 = vmatmul.mubr.msk.f32.vlgmr.msra.gmra.mrb[40].mxu0 %vm1286_vm6, %v4037_v61  ;;  %v4862_v0 = vpop.permute.xlu0 %4861 }
 0x7c7   : > { %7194 = vmatmul.mubr.msk.f32.vlgmr.msra.gmra.mrb[44].mxu1 %vm1286_vm6, %v4035_v34  ;;  %7207 = vmatpush3.msk.msra.mxu0 %vm1290_vm5, %v8276_v4 }
 0x7c8   : > { %v7518_v30 = vpop.eup %7517  ;;  %7202 = vmatpush3.msk.msra.mxu1 %vm1290_vm5, %v8274_v3  ;;  %7203 = vmatprep.mubr.msk.f32.mxu1 %vm7580_vm2, %v7578_v10 }
 0x7c9   : > { %v7520_v2 = vpop.eup %7519  ;;  %v4041_v35 = vmul.f32 %v7518_v30, %v8295_v47  ;;  %7208 = vmatprep.mubr.msk.f32.mxu0 %vm7580_vm2, %v7578_v10  ;;  %7211 = vmatprep.subr.mxu1 %v7578_v10 }
 0x7ca   : > { %v4039_v62 = vmul.f32 %v7520_v2, %v8297_v1  ;;  %7216 = vmatprep.subr.mxu0 %v7578_v10 }
 0x7cb   : > { %7209 = vmatmul.mubr.msk.f32.vlgmr.msra.gmra.mrb[42].mxu0 %vm1286_vm6, %v4041_v35 }
 0x7cc   : > { %7204 = vmatmul.mubr.msk.f32.vlgmr.msra.gmra.mrb[46].mxu1 %vm1286_vm6, %v4039_v62  ;;  %7217 = vmatpush3.msk.msra.mxu0 %vm1290_vm5, %v8280_v6 }
 0x7cd   : > { %v7522_v3 = vpop.eup %7521  ;;  %7212 = vmatpush3.msk.msra.mxu1 %vm1290_vm5, %v8278_v5  ;;  %7213 = vmatprep.mubr.msk.f32.mxu1 %vm7580_vm2, %v7578_v10  ;;  %v4940_v5 = vpop.permute.xlu1 %4939 }
 0x7ce   : > { %v4043_v4 = vmul.f32 %v7522_v3, %v8303_v25  ;;  %7221 = vmatprep.subr.mxu1 %v7578_v10  ;;  %7218 = vmatprep.mubr.msk.f32.mxu0 %vm7580_vm2, %v7578_v10 }
 0x7cf   : > { %7226 = vmatprep.subr.mxu0 %v7578_v10 }
 0x7d0   : > { %7214 = vmatmul.mubr.msk.f32.vlgmr.msra.gmra.mrb[48].mxu1 %vm1286_vm6, %v4043_v4 }
 0x7d1   : > { %7222 = vmatpush3.msk.msra.mxu1 %vm1290_vm5, %v8282_v7  ;;  %7223 = vmatprep.mubr.msk.f32.mxu1 %vm7580_vm2, %v7578_v10 }
 0x7d2   : > { %7231 = vmatprep.subr.mxu1 %v7578_v10 }
 0x7f2   : > { %v4028_v6 = vpop.xlane.xlu1 %4027 }
 0x7f3   : > { %7523 = vrcp.f32 %v4028_v6 }
 0x7f6   : > { %v5098_v16 = vpop.permute.xlu1 %5097 }
 0x7f7   : > { %v4031_v45 = vpop.xlane.xlu0 %4030 }
 0x7f8   : > { %7525 = vrcp.f32 %v4031_v45 }
 0x7fb   : > { %v5020_v1 = vpop.permute.xlu0 %5019 }
 0x7fd   : > { %v7524_v47 = vpop.eup %7523 }
 0x7fe   : > { %v4045_v59 = vmul.f32 %v7524_v47, %v8313_v44 }
 0x7ff   : > { %v5018_v22 = vpop.permute.xlu0 %5017 }
 0x800   : > { %7219 = vmatmul.mubr.msk.f32.vlgmr.msra.gmra.mrb[44].mxu0 %vm1286_vm6, %v4045_v59 }
 0x801   : > { %7227 = vmatpush3.xpose.msk.msra.mxu0 %vm531_vm3, %v8284_v8  ;;  %7228 = vmatprep.mubr.msk.f32.mxu0 %vm7580_vm2, %v7578_v10  ;;  %v5096_v8 = vpop.permute.xlu1 %5095 }
 0x802   : > { %v7526_v7 = vpop.eup %7525  ;;  %7236 = vmatprep.subr.mxu0 %v7578_v10 }
 0x803   : > { %v4047_v25 = vmul.f32 %v7526_v7, %v8317_v17 }
 0x804   : > { %7229 = vmatmul.mubr.msk.f32.vlgmr.msra.gmra.mrb[46].mxu0 %vm531_vm3, %v8288_v15  ;;  %v5176_v15 = vpop.permute.xlu0 %5175 }
 0x805   : > { %7224 = vmatmul.mubr.msk.f32.vlgmr.msra.gmra.mrb[50].mxu1 %vm1286_vm6, %v4047_v25  ;;  %7237 = vmatpush3.xpose.msk.msra.mxu0 %vm531_vm3, %v8339_v63 }
 0x806   : > { %7232 = vmatpush3.xpose.msk.msra.mxu1 %vm531_vm3, %v8286_v11  ;;  %7233 = vmatprep.mubr.msk.f32.mxu1 %vm7580_vm2, %v7578_v10  ;;  %v5254_v11 = vpop.permute.xlu1 %5253 }
 0x807   : > { %7238 = vmatprep.mubr.msk.f32.mxu0 %vm7580_vm2, %v7578_v10  ;;  %7241 = vmatprep.subr.mxu1 %v7578_v10 }
 0x808   : > { %7246 = vmatprep.subr.mxu0 %v7578_v10  ;;  %7239 = vmatmul.mubr.msk.f32.vlgmr.msra.gmra.mrb[48].mxu0 %vm531_vm3, %v4862_v0 }
 0x809   : > { %7234 = vmatmul.mubr.msk.f32.vlgmr.msra.gmra.mrb[52].mxu1 %vm531_vm3, %v8290_v24  ;;  %7247 = vmatpush3.xpose.msk.msra.mxu0 %vm531_vm3, %v5020_v1  ;;  %v5174_v24 = vpop.permute.xlu0 %5173 }
 0x80a   : > { %7242 = vmatpush3.xpose.msk.msra.mxu1 %vm531_vm3, %v8337_v58  ;;  %7243 = vmatprep.mubr.msk.f32.mxu1 %vm7580_vm2, %v7578_v10  ;;  %v5252_v50 = vpop.permute.xlu1 %5251 }
 0x80b   : > { %7248 = vmatprep.mubr.msk.f32.mxu0 %vm7580_vm2, %v7578_v10  ;;  %7251 = vmatprep.subr.mxu1 %v7578_v10 }
 0x80c   : > { %7256 = vmatprep.subr.mxu0 %v7578_v10  ;;  %7249 = vmatmul.mubr.msk.f32.vlgmr.msra.gmra.mrb[50].mxu0 %vm531_vm3, %v5018_v22 }
 0x80d   : > { %7244 = vmatmul.mubr.msk.f32.vlgmr.msra.gmra.mrb[54].mxu1 %vm531_vm3, %v4940_v5  ;;  %7257 = vmatpush3.xpose.msk.msra.mxu0 %vm531_vm3, %v5176_v15 }
 0x80e   : > { %7252 = vmatpush3.xpose.msk.msra.mxu1 %vm531_vm3, %v5098_v16  ;;  %7253 = vmatprep.mubr.msk.f32.mxu1 %vm7580_vm2, %v7578_v10 }
 0x80f   : > { %7258 = vmatprep.mubr.msk.f32.mxu0 %vm7580_vm2, %v7578_v10  ;;  %7261 = vmatprep.subr.mxu1 %v7578_v10 }
 0x810   : > { %7259 = vmatmul.mubr.msk.f32.vlgmr.msra.gmra.mrb[52].mxu0 %vm531_vm3, %v5174_v24  ;;  %7266 = vmatprep.subr.mxu0 %v7578_v10 }
 0x811   : > { %7254 = vmatmul.mubr.msk.f32.vlgmr.msra.gmra.mrb[56].mxu1 %vm531_vm3, %v5096_v8  ;;  %7268 = vmatprep.mubr.msk.f32.mxu0 %vm7580_vm2, %v7578_v10 }
 0x812   : > { %7262 = vmatpush3.xpose.msk.msra.mxu1 %vm531_vm3, %v5254_v11  ;;  %7263 = vmatprep.mubr.msk.f32.mxu1 %vm7580_vm2, %v7578_v10 }
 0x813   : > { %7271 = vmatprep.subr.mxu1 %v7578_v10 }
 0x815   : > { %7264 = vmatmul.mubr.msk.f32.vlgmr.msra.gmra.mrb[58].mxu1 %vm531_vm3, %v5252_v50 }
 0x816   : > { %7273 = vmatprep.mubr.msk.f32.mxu1 %vm7580_vm2, %v7578_v10 }
 0x895   : > { %v8434_v29 = vpop.f32.mrb[38].mxu0 }
 0x896   : > { %v7190_v31 = vpop.f32.mrb[39].mxu0 }
 0x899   : > { %v8436_v55 = vpop.f32.mrb[40].mxu0 }
 0x89a   : > { %v8438_v38 = vpop.f32.mrb[44].mxu1  ;;  %v7200_v42 = vpop.f32.mrb[41].mxu0 }
 0x89b   : > { %v7195_v44 = vpop.f32.mrb[45].mxu1 }
 0x89e   : > { %v8440_v43 = vpop.f32.mrb[42].mxu0 }
 0x89f   : > { %v8442_v17 = vpop.f32.mrb[46].mxu1  ;;  %v7210_v19 = vpop.f32.mrb[43].mxu0 }
 0x8a0   : > { %v7205_v58 = vpop.f32.mrb[47].mxu1 }
 0x8a3   : > { %v8444_v18 = vpop.f32.mrb[48].mxu1 }
 0x8a4   : > { %v7215_v63 = vpop.f32.mrb[49].mxu1 }
 0x8d3   : > { %v8446_v48 = vpop.f32.mrb[44].mxu0 }
 0x8d4   : > { %v7220_v49 = vpop.f32.mrb[45].mxu0 }
 0x8d7   : > { %v4779_v51 = vpop.f32.mrb[46].mxu0 }
 0x8d8   : > { %v8448_v52 = vpop.f32.mrb[50].mxu1  ;;  %v7230_v46 = vpop.f32.mrb[47].mxu0  ;;  %v5329_v56 = vsel %vm1195_vm4, %v4779_v51, -inf }
 0x8d9   : > { %v7225_v60 = vpop.f32.mrb[51].mxu1  ;;  %5330 = vmax.xlane.f32.xlu0 %v5329_v56 }
 0x8db   : > { %v4935_v54 = vpop.f32.mrb[48].mxu0 }
 0x8dc   : > { %v4857_v53 = vpop.f32.mrb[52].mxu1  ;;  %v7240_v61 = vpop.f32.mrb[49].mxu0  ;;  %v5335_v34 = vsel %vm1195_vm4, %v4935_v54, -inf }
 0x8dd   : > { %v7235_v30 = vpop.f32.mrb[53].mxu1  ;;  %5336 = vmax.xlane.f32.xlu0 %v5335_v34  ;;  %v5332_v2 = vsel %vm1195_vm4, %v4857_v53, -inf }
 0x8de   : > { %5333 = vmax.xlane.f32.xlu1 %v5332_v2 }
 0x8df   : > { %v5091_v35 = vpop.f32.mrb[50].mxu0 }
 0x8e0   : > { %v5013_v62 = vpop.f32.mrb[54].mxu1  ;;  %v7250_v3 = vpop.f32.mrb[51].mxu0  ;;  %v5341_v4 = vsel %vm1195_vm4, %v5091_v35, -inf }
 0x8e1   : > { %v7245_v5 = vpop.f32.mrb[55].mxu1  ;;  %v5338_v6 = vsel %vm1195_vm4, %v5013_v62, -inf }
 0x8e2   : > { %5342 = vmax.xlane.f32.xlu1 %v5341_v4  ;;  %5339 = vmax.xlane.f32.xlu0 %v5338_v6 }
 0x8e3   : > { %v5247_v0 = vpop.f32.mrb[52].mxu0 }
 0x8e4   : > { %v5169_v45 = vpop.f32.mrb[56].mxu1  ;;  %v7260_v47 = vpop.f32.mrb[53].mxu0  ;;  %v5347_v1 = vsel %vm1195_vm4, %v5247_v0, -inf }
 0x8e5   : > { %v7255_v59 = vpop.f32.mrb[57].mxu1  ;;  %v5344_v7 = vsel %vm1195_vm4, %v5169_v45, -inf }
 0x8e6   : > { %5348 = vmax.xlane.f32.xlu1 %v5347_v1  ;;  %5345 = vmax.xlane.f32.xlu0 %v5344_v7 }
 0x8e8   : > { %v5325_v16 = vpop.f32.mrb[58].mxu1 }
 0x8e9   : > { %v7265_v25 = vpop.f32.mrb[59].mxu1  ;;  %v5350_v22 = vsel %vm1195_vm4, %v5325_v16, -inf }
 0x8ea   : > { %5351 = vmax.xlane.f32.xlu0 %v5350_v22 }
 0x8f7   : > { %5417 = vrot.lane.b32.xlu1 %v7700_v28, %s7591_s23 }
 0x8fb   : > { %5571 = vrot.lane.b32.xlu1 %v7705_v32, %s7591_s23 }
 0x8ff   : > { %5648 = vrot.lane.b32.xlu1 %v7714_v36, %s7591_s23 }
 0x900   : > { %5494 = vrot.lane.b32.xlu0 %v7708_v33, %s7591_s23 }
 0x903   : > { %5802 = vrot.lane.b32.xlu1 %v7722_v39, %s7591_s23 }
 0x904   : > { %5725 = vrot.lane.b32.xlu0 %v7717_v37, %s7591_s23 }
 0x966   : > { %v5331_v8 = vpop.xlane.xlu0 %5330 }
 0x967   : > { %v5353_v15 = vsub.f32 %v4779_v51, %v5331_v8 }
 0x969   : > { %v5361_v11 = vmul.f32 1.442695, %v5353_v15 }
 0x96a   : > { %v5337_v24 = vpop.xlane.xlu0 %5336 }
 0x96b   : > { %7527 = vpow2.f32 %v5361_v11  ;;  %v5355_v28 = vsub.f32 %v4935_v54, %v5337_v24  ;;  %v5334_v50 = vpop.xlane.xlu1 %5333 }
 0x96c   : > { %v5354_v32 = vsub.f32 %v4857_v53, %v5334_v50 }
 0x96d   : > { %v5365_v31 = vmul.f32 1.442695, %v5355_v28 }
 0x96e   : > { %v5363_v42 = vmul.f32 1.442695, %v5354_v32 }
 0x96f   : > { %7529 = vpow2.f32 %v5365_v31  ;;  %v5343_v36 = vpop.xlane.xlu1 %5342  ;;  %v5340_v44 = vpop.xlane.xlu0 %5339 }
 0x970   : > { %7531 = vpow2.f32 %v5363_v42  ;;  %v5357_v33 = vsub.f32 %v5091_v35, %v5343_v36  ;;  %v5356_v19 = vsub.f32 %v5013_v62, %v5340_v44 }
 0x972   : > { %v5369_v39 = vmul.f32 1.442695, %v5357_v33  ;;  %v5367_v58 = vmul.f32 1.442695, %v5356_v19 }
 0x973   : > { %v5349_v63 = vpop.xlane.xlu1 %5348  ;;  %v5346_v37 = vpop.xlane.xlu0 %5345 }
 0x974   : > { %7533 = vpow2.f32 %v5369_v39  ;;  %v5359_v49 = vsub.f32 %v5247_v0, %v5349_v63  ;;  %v5358_v51 = vsub.f32 %v5169_v45, %v5346_v37 }
 0x975   : > { %v8470_v46 = vpop.eup %7527  ;;  %7535 = vpow2.f32 %v5367_v58 }
 0x976   : > { %v5373_v56 = vmul.f32 1.442695, %v5359_v49  ;;  %v5371_v60 = vmul.f32 1.442695, %v5358_v51  ;;  %v5377_v54 = vsel %vm1195_vm4, %v8470_v46, 0.0 }
 0x977   : > { %v5418_v53 = vpop.permute.xlu1 %5417  ;;  %v5352_v61 = vpop.xlane.xlu0 %5351  ;;  %5378 = vadd.xlane.f32.xlu1 %v5377_v54 }
 0x978   : > { %7537 = vpow2.f32 %v5373_v56  ;;  %v5360_v34 = vsub.f32 %v5325_v16, %v5352_v61  ;;  %7267 = vmatpush3.msk.msra.mxu0 %vm1290_vm5, %v5418_v53 }
 0x979   : > { %v8475_v30 = vpop.eup %7529  ;;  %7539 = vpow2.f32 %v5371_v60  ;;  %7276 = vmatprep.subr.mxu0 %v7578_v10 }
 0x97a   : > { %v8478_v2 = vpop.eup %7531  ;;  %v5375_v35 = vmul.f32 1.442695, %v5360_v34  ;;  %v5383_v62 = vsel %vm1195_vm4, %v8475_v30, 0.0 }
 0x97b   : > { %v5495_v3 = vpop.permute.xlu0 %5494  ;;  %5384 = vadd.xlane.f32.xlu1 %v5383_v62  ;;  %v5380_v4 = vsel %vm1195_vm4, %v8478_v2, 0.0 }
 0x97c   : > { %7541 = vpow2.f32 %v5375_v35  ;;  %5381 = vadd.xlane.f32.xlu0 %v5380_v4  ;;  %7272 = vmatpush3.msk.msra.mxu1 %vm1290_vm5, %v5495_v3 }
 0x97d   : > { %7281 = vmatprep.subr.mxu1 %v7578_v10 }
 0x97e   : > { %v8486_v5 = vpop.eup %7533 }
 0x97f   : > { %v8488_v6 = vpop.eup %7535  ;;  %v5389_v0 = vsel %vm1195_vm4, %v8486_v5, 0.0 }
 0x980   : > { %5390 = vadd.xlane.f32.xlu1 %v5389_v0  ;;  %v5386_v45 = vsel %vm1195_vm4, %v8488_v6, 0.0 }
 0x981   : > { %5387 = vadd.xlane.f32.xlu0 %v5386_v45 }
 0x982   : > { %v8494_v47 = vpop.eup %7537 }
 0x983   : > { %v8496_v1 = vpop.eup %7539  ;;  %v5395_v59 = vsel %vm1195_vm4, %v8494_v47, 0.0 }
 0x984   : > { %5396 = vadd.xlane.f32.xlu1 %v5395_v59  ;;  %v5392_v7 = vsel %vm1195_vm4, %v8496_v1, 0.0 }
 0x985   : > { %5393 = vadd.xlane.f32.xlu0 %v5392_v7  ;;  %v6084_v7 = vld [vmem:[%s7658_s15 + $0x10] sm:$0xff] }
 0x986   : > { %v8502_v16 = vpop.eup %7541 }
 0x987   : > { %v5398_v25 = vsel %vm1195_vm4, %v8502_v16, 0.0 }
 0x989   : > { %5399 = vadd.xlane.f32.xlu0 %v5398_v25 }
 0x995   : > { %5956 = vrot.lane.b32.xlu1 %v7730_v41, %s7591_s23 }
 0x999   : > { %3305 = vrot.lane.b32.xlu1 %v8242_v14, %s7592_s24  ;;  %v5726_v14 = vpop.permute.xlu0 %5725 }
 0x99d   : > { %3309 = vrot.lane.b32.xlu1 %v8246_v23, %s7592_s24 }
 0x99f   : > { %5879 = vrot.lane.b32.xlu0 %v7725_v40, %s7591_s23  ;;  %v5572_v40 = vpop.permute.xlu1 %5571 }
 0x9a1   : > { %3313 = vrot.lane.b32.xlu1 %v8250_v26, %s7592_s24 }
 0x9a3   : > { %3303 = vrot.lane.b32.xlu0 %v8238_v9, %s7592_s24  ;;  %v5649_v41 = vpop.permute.xlu1 %5648 }
 0x9a5   : > { %3317 = vrot.lane.b32.xlu1 %v8252_v27, %s7592_s24 }
 0x9a7   : > { %3307 = vrot.lane.b32.xlu0 %v8240_v13, %s7592_s24  ;;  %v5803_v9 = vpop.permute.xlu1 %5802 }
 0x9a9   : > { %4674 = vrot.lane.b32.xlu1 %v8438_v38, %s7593_s26 }
 0x9ab   : > { %3311 = vrot.lane.b32.xlu0 %v8244_v57, %s7592_s24 }
 0x9ad   : > { %4678 = vrot.lane.b32.xlu1 %v8442_v17, %s7593_s26 }
 0x9af   : > { %3315 = vrot.lane.b32.xlu0 %v8248_v21, %s7592_s24 }
 0x9b1   : > { %4682 = vrot.lane.b32.xlu1 %v8444_v18, %s7593_s26 }
 0x9b3   : > { %4672 = vrot.lane.b32.xlu0 %v8434_v29, %s7593_s26 }
 0x9b5   : > { %4686 = vrot.lane.b32.xlu1 %v8448_v52, %s7593_s26 }
 0x9b7   : > { %4676 = vrot.lane.b32.xlu0 %v8436_v55, %s7593_s26 }
 0x9bb   : > { %4680 = vrot.lane.b32.xlu0 %v8440_v43, %s7593_s26 }
 0x9bf   : > { %4684 = vrot.lane.b32.xlu0 %v8446_v48, %s7593_s26 }
 0xa04   : > { %v5379_v13 = vpop.xlane.xlu1 %5378 }
 0xa05   : > { %7543 = vrcp.f32 %v5379_v13 }
 0xa08   : > { %v5385_v57 = vpop.xlane.xlu1 %5384 }
 0xa09   : > { %7545 = vrcp.f32 %v5385_v57  ;;  %v5382_v23 = vpop.xlane.xlu0 %5381 }
 0xa0a   : > { %7547 = vrcp.f32 %v5382_v23 }
 0xa0d   : > { %v5391_v21 = vpop.xlane.xlu1 %5390 }
 0xa0e   : > { %7549 = vrcp.f32 %v5391_v21  ;;  %v5388_v26 = vpop.xlane.xlu0 %5387 }
 0xa0f   : > { %v7544_v27 = vpop.eup %7543  ;;  %7551 = vrcp.f32 %v5388_v26 }
 0xa10   : > { %v5402_v29 = vmul.f32 %v7544_v27, %v8470_v46 }
 0xa11   : > { %v5397_v55 = vpop.xlane.xlu1 %5396 }
 0xa12   : > { %7553 = vrcp.f32 %v5397_v55  ;;  %v5394_v38 = vpop.xlane.xlu0 %5393  ;;  %7269 = vmatmul.mubr.msk.f32.vlgmr.msra.gmra.mrb[54].mxu0 %vm1286_vm6, %v5402_v29 }
 0xa13   : > { %v7546_v43 = vpop.eup %7545  ;;  %7555 = vrcp.f32 %v5394_v38  ;;  %7277 = vmatpush3.msk.msra.mxu0 %vm1290_vm5, %v5572_v40  ;;  %7278 = vmatprep.mubr.msk.f32.mxu0 %vm7580_vm2, %v7578_v10 }
 0xa14   : > { %v7548_v17 = vpop.eup %7547  ;;  %v5406_v18 = vmul.f32 %v7546_v43, %v8475_v30  ;;  %7286 = vmatprep.subr.mxu0 %v7578_v10 }
 0xa15   : > { %v5404_v48 = vmul.f32 %v7548_v17, %v8478_v2  ;;  %v5957_v52 = vpop.permute.xlu1 %5956 }
 0xa16   : > { %v5400_v22 = vpop.xlane.xlu0 %5399  ;;  %7279 = vmatmul.mubr.msk.f32.vlgmr.msra.gmra.mrb[56].mxu0 %vm1286_vm6, %v5406_v18 }
 0xa17   : > { %7557 = vrcp.f32 %v5400_v22  ;;  %7274 = vmatmul.mubr.msk.f32.vlgmr.msra.gmra.mrb[60].mxu1 %vm1286_vm6, %v5404_v48  ;;  %7287 = vmatpush3.msk.msra.mxu0 %vm1290_vm5, %v5726_v14 }
 0xa18   : > { %v7550_v8 = vpop.eup %7549  ;;  %7282 = vmatpush3.msk.msra.mxu1 %vm1290_vm5, %v5649_v41  ;;  %7283 = vmatprep.mubr.msk.f32.mxu1 %vm7580_vm2, %v7578_v10 }
 0xa19   : > { %v7552_v15 = vpop.eup %7551  ;;  %v5410_v11 = vmul.f32 %v7550_v8, %v8486_v5  ;;  %v3306_v24 = vpop.permute.xlu1 %3305  ;;  %7288 = vmatprep.mubr.msk.f32.mxu0 %vm7580_vm2, %v7578_v10  ;;  %7291 = vmatprep.subr.mxu1 %v7578_v10  ;;  %v6082_v5 = vld [vmem:[%s7658_s15] sm:$0xff] }
 0xa1a   : > { %v5408_v28 = vmul.f32 %v7552_v15, %v8488_v6  ;;  %3329 = vst.msk [vmem:[#allocation3 + $0x2] sm:$0x3] %vm3327_vm8, %v3306_v24  ;;  %v5880_v50 = vpop.permute.xlu0 %5879  ;;  %7296 = vmatprep.subr.mxu0 %v7578_v10  ;;  %v6083_v6 = vld [vmem:[%s7658_s15 + $0x8] sm:$0xff] }
 0xa1b   : > { %7289 = vmatmul.mubr.msk.f32.vlgmr.msra.gmra.mrb[58].mxu0 %vm1286_vm6, %v5410_v11  ;;  %v7366_v0 = vpack.c.bf16 %v6083_v6, %v6082_v5 }
 0xa1c   : > { %v7554_v32 = vpop.eup %7553  ;;  %7284 = vmatmul.mubr.msk.f32.vlgmr.msra.gmra.mrb[62].mxu1 %vm1286_vm6, %v5408_v28  ;;  %7297 = vmatpush3.msk.msra.mxu0 %vm1290_vm5, %v5880_v50 }
 0xa1d   : > { %v7556_v31 = vpop.eup %7555  ;;  %v5414_v42 = vmul.f32 %v7554_v32, %v8494_v47  ;;  %7292 = vmatpush3.msk.msra.mxu1 %vm1290_vm5, %v5803_v9  ;;  %v3310_v36 = vpop.permute.xlu1 %3309  ;;  %7293 = vmatprep.mubr.msk.f32.mxu1 %vm7580_vm2, %v7578_v10 }
 0xa1e   : > { %v5412_v44 = vmul.f32 %v7556_v31, %v8496_v1  ;;  %3331 = vst.msk [vmem:[#allocation3 + $0x6] sm:$0x3] %vm3327_vm8, %v3310_v36  ;;  %v3304_v33 = vpop.permute.xlu0 %3303  ;;  %7298 = vmatprep.mubr.msk.f32.mxu0 %vm7580_vm2, %v7578_v10  ;;  %7301 = vmatprep.subr.mxu1 %v7578_v10 }
 0xa1f   : > { %3328 = vst.msk [vmem:[#allocation3] sm:$0x3] %vm3327_vm8, %v3304_v33  ;;  %7299 = vmatmul.mubr.msk.f32.vlgmr.msra.gmra.mrb[60].mxu0 %vm1286_vm6, %v5414_v42  ;;  %7367 = vmatprep.subr.bf16.mxu0 %v7366_v0 }
 0xa20   : > { %7294 = vmatmul.mubr.msk.f32.vlgmr.msra.gmra.mrb[64].mxu1 %vm1286_vm6, %v5412_v44  ;;  %7369 = vmatpush3.bf16.msra.mxu0 %v7366_v0  ;;  %v6252_v0 = vld [vmem:[%s7663_s18] sm:$0xff] }
 0xa21   : > { %v7558_v19 = vpop.eup %7557  ;;  %7302 = vmatpush3.msk.msra.mxu1 %vm1290_vm5, %v5957_v52  ;;  %v3314_v39 = vpop.permute.xlu1 %3313  ;;  %7303 = vmatprep.mubr.msk.f32.mxu1 %vm7580_vm2, %v7578_v10 }
 0xa22   : > { %v5416_v58 = vmul.f32 %v7558_v19, %v8502_v16  ;;  %3333 = vst.msk [vmem:[#allocation3 + $0xa] sm:$0x3] %vm3327_vm8, %v3314_v39  ;;  %v3308_v63 = vpop.permute.xlu0 %3307  ;;  %v6085_v16 = vld [vmem:[%s7658_s15 + $0x18] sm:$0xff]  ;;  %v6088_v39 = vsub.s32 2, %v7686_v12 }
 0xa23   : > { %3330 = vst.msk [vmem:[#allocation3 + $0x4] sm:$0x3] %vm3327_vm8, %v3308_v63  ;;  %v7370_v40 = vpack.c.bf16 %v6085_v16, %v6084_v7  ;;  %v6343_v16 = vld [vmem:[%s7668_s21] sm:$0xff] }
 0xa24   : > { %7304 = vmatmul.mubr.msk.f32.vlgmr.msra.gmra.mrb[66].mxu1 %vm1286_vm6, %v5416_v58  ;;  %v8608_v58 = vld [vmem:[%s7673_s25] sm:$0xff] }
 0xa25   : > { %v3318_v37 = vpop.permute.xlu1 %3317  ;;  %7371 = vmatprep.subr.bf16.mxu0 %v7370_v40  ;;  %v6089_v63 = vrot.slane %v8608_v58, %v6088_v39 }
 0xa26   : > { %3335 = vst.msk [vmem:[#allocation3 + $0xe] sm:$0x3] %vm3327_vm8, %v3318_v37  ;;  %v3312_v49 = vpop.permute.xlu0 %3311  ;;  %7373 = vmatpush3.bf16.msra.mxu0 %v7370_v40  ;;  %v6345_v40 = vld [vmem:[%s7668_s21 + $0x10] sm:$0xff] }
 0xa27   : > { %3332 = vst.msk [vmem:[#allocation3 + $0x8] sm:$0x3] %vm3327_vm8, %v3312_v49 }
 0xa29   : > { %v4675_v51 = vpop.permute.xlu1 %4674 }
 0xa2a   : > { %4698 = vst.msk [vmem:[#allocation3 + $0x2] sm:$0x3] %vm4696_vm9, %v4675_v51  ;;  %v3316_v10 = vpop.permute.xlu0 %3315 }
 0xa2b   : > { %3334 = vst.msk [vmem:[#allocation3 + $0xc] sm:$0x3] %vm3327_vm8, %v3316_v10 }
 0xa2d   : > { %v4679_v46 = vpop.permute.xlu1 %4678 }
 0xa2e   : > { %4700 = vst.msk [vmem:[#allocation3 + $0x6] sm:$0x3] %vm4696_vm9, %v4679_v46  ;;  %v4673_v56 = vpop.permute.xlu0 %4672  ;;  %v7568_v46 = vld [vmem:[#allocation2 + $0x8] sm:$0xff] }
 0xa2f   : > { %4697 = vst.msk [vmem:[#allocation3] sm:$0x3] %vm4696_vm9, %v4673_v56 }
 0xa31   : > { %v4683_v60 = vpop.permute.xlu1 %4682 }
 0xa32   : > { %4702 = vst.msk [vmem:[#allocation3 + $0xa] sm:$0x3] %vm4696_vm9, %v4683_v60  ;;  %v4677_v54 = vpop.permute.xlu0 %4676  ;;  %v7569_v60 = vld [vmem:[#allocation2] sm:$0xff] }
 0xa33   : > { %4699 = vst.msk [vmem:[#allocation3 + $0x4] sm:$0x3] %vm4696_vm9, %v4677_v54 }
 0xa35   : > { %v4687_v53 = vpop.permute.xlu1 %4686 }
 0xa36   : > { %4704 = vst.msk [vmem:[#allocation3 + $0xe] sm:$0x3] %vm4696_vm9, %v4687_v53  ;;  %v4681_v61 = vpop.permute.xlu0 %4680 }
 0xa37   : > { %4701 = vst.msk [vmem:[#allocation3 + $0x8] sm:$0x3] %vm4696_vm9, %v4681_v61 }
 0xa3a   : > { %v4685_v34 = vpop.permute.xlu0 %4684 }
 0xa3b   : > { %4703 = vst.msk [vmem:[#allocation3 + $0xc] sm:$0x3] %vm4696_vm9, %v4685_v34 }
 0xae5   : > { %v5490_v30 = vpop.f32.mrb[54].mxu0 }
 0xae6   : > { %v7270_v2 = vpop.f32.mrb[55].mxu0  ;;  %6041 = vrot.lane.b32.xlu0 %v5490_v30, %s7594_s10 }
 0xae9   : > { %v5644_v35 = vpop.f32.mrb[56].mxu0 }
 0xaea   : > { %v5567_v62 = vpop.f32.mrb[60].mxu1  ;;  %v7280_v3 = vpop.f32.mrb[57].mxu0  ;;  %6045 = vrot.lane.b32.xlu0 %v5644_v35, %s7594_s10 }
 0xaeb   : > { %6043 = vrot.lane.b32.xlu1 %v5567_v62, %s7594_s10  ;;  %v7275_v4 = vpop.f32.mrb[61].mxu1 }
 0xaee   : > { %v5798_v45 = vpop.f32.mrb[58].mxu0 }
 0xaef   : > { %v5721_v47 = vpop.f32.mrb[62].mxu1  ;;  %6049 = vrot.lane.b32.xlu0 %v5798_v45, %s7594_s10  ;;  %v7290_v1 = vpop.f32.mrb[59].mxu0  ;;  %v6253_v45 = vld [vmem:[%s7663_s18 + $0x8] sm:$0xff] }
 0xaf0   : > { %6047 = vrot.lane.b32.xlu1 %v5721_v47, %s7594_s10  ;;  %v7285_v59 = vpop.f32.mrb[63].mxu1  ;;  %v7374_v47 = vpack.c.bf16 %v6253_v45, %v6252_v0  ;;  %v6254_v1 = vld [vmem:[%s7663_s18 + $0x10] sm:$0xff] }
 0xaf1   : > { %v6255_v59 = vld [vmem:[%s7663_s18 + $0x18] sm:$0xff] }
 0xaf2   : > { %v5952_v25 = vpop.f32.mrb[60].mxu0  ;;  %7375 = vmatprep.subr.bf16.mxu1 %v7374_v47  ;;  %v7378_v7 = vpack.c.bf16 %v6255_v59, %v6254_v1 }
 0xaf3   : > { %v5875_v41 = vpop.f32.mrb[64].mxu1  ;;  %6053 = vrot.lane.b32.xlu0 %v5952_v25, %s7594_s10  ;;  %v7300_v9 = vpop.f32.mrb[61].mxu0  ;;  %7377 = vmatpush3.bf16.msra.mxu1 %v7374_v47  ;;  %v6344_v25 = vld [vmem:[%s7668_s21 + $0x8] sm:$0xff] }
 0xaf4   : > { %6051 = vrot.lane.b32.xlu1 %v5875_v41, %s7594_s10  ;;  %v7295_v13 = vpop.f32.mrb[65].mxu1  ;;  %7379 = vmatprep.subr.bf16.mxu1 %v7378_v7  ;;  %v7382_v41 = vpack.c.bf16 %v6344_v25, %v6343_v16  ;;  %v6346_v9 = vld [vmem:[%s7668_s21 + $0x18] sm:$0xff] }
 0xaf5   : > { %v7386_v13 = vpack.c.bf16 %v6346_v9, %v6345_v40  ;;  %v6467_v40 = vsub.s32 6, %v7686_v12 }
 0xaf6   : > { %7383 = vmatprep.subr.bf16.mxu0 %v7382_v41 }
 0xaf7   : > { %v6029_v14 = vpop.f32.mrb[66].mxu1  ;;  %7381 = vmatpush3.bf16.msra.mxu1 %v7378_v7  ;;  %v6468_v9 = vrot.slane %v8608_v58, %v6467_v40 }
 0xaf8   : > { %6055 = vrot.lane.b32.xlu1 %v6029_v14, %s7594_s10  ;;  %v7305_v57 = vpop.f32.mrb[67].mxu1  ;;  %v6347_v14 = vld [vmem:[%s7668_s21 + $0x20] sm:$0xff] }
 0xaf9   : > { %v6348_v57 = vld [vmem:[%s7668_s21 + $0x28] sm:$0xff] }
 0xb58   : > { %v6042_v23 = vpop.permute.xlu0 %6041 }
 0xb59   : > { %6066 = vst.msk [vmem:[#allocation3] sm:$0x3] %vm6065_vm10, %v6042_v23  ;;  %v7390_v23 = vpack.c.bf16 %v6348_v57, %v6347_v14 }
 0xb5c   : > { %v6046_v21 = vpop.permute.xlu0 %6045 }
 0xb5d   : > { %6068 = vst.msk [vmem:[#allocation3 + $0x4] sm:$0x3] %vm6065_vm10, %v6046_v21  ;;  %v6044_v26 = vpop.permute.xlu1 %6043 }
 0xb5e   : > { %6067 = vst.msk [vmem:[#allocation3 + $0x2] sm:$0x3] %vm6065_vm10, %v6044_v26 }
 0xb60   : > { %v6074_v17 = vld [vmem:[#allocation3] sm:$0x3] }
 0xb61   : > { %v6050_v27 = vpop.permute.xlu0 %6049 }
 0xb62   : > { %6070 = vst.msk [vmem:[#allocation3 + $0x8] sm:$0x3] %vm6065_vm10, %v6050_v27  ;;  %v6048_v29 = vpop.permute.xlu1 %6047 }
 0xb63   : > { %6069 = vst.msk [vmem:[#allocation3 + $0x6] sm:$0x3] %vm6065_vm10, %v6048_v29 }
 0xb64   : > { %v6076_v52 = vld [vmem:[#allocation3 + $0x4] sm:$0x3] }
 0xb65   : > { %v6054_v55 = vpop.permute.xlu0 %6053  ;;  %v6075_v43 = vld [vmem:[#allocation3 + $0x2] sm:$0x3] }
 0xb66   : > { %6072 = vst.msk [vmem:[#allocation3 + $0xc] sm:$0x3] %vm6065_vm10, %v6054_v55  ;;  %v6052_v38 = vpop.permute.xlu1 %6051  ;;  %v6098_v18 = vcombine.low %v6074_v17, %v6075_v43  ;;  %v6242_v43 = vsub.s32 4, %v7686_v12  ;;  %v6248_v17 = vsub.s32 5, %v7686_v12 }
 0xb67   : > { %6071 = vst.msk [vmem:[#allocation3 + $0xa] sm:$0x3] %vm6065_vm10, %v6052_v38 }
 0xb68   : > { %v6106_v15 = vrot.slane %v6098_v18, %v7695_v20  ;;  %v6243_v18 = vrot.slane %v8608_v58, %v6242_v43 }
 0xb69   : > { %v6078_v50 = vld [vmem:[#allocation3 + $0x8] sm:$0x3] }
 0xb6a   : > { %v6056_v48 = vpop.permute.xlu1 %6055  ;;  %v6077_v22 = vld [vmem:[#allocation3 + $0x6] sm:$0x3] }
 0xb6b   : > { %6073 = vst.msk [vmem:[#allocation3 + $0xe] sm:$0x3] %vm6065_vm10, %v6056_v48  ;;  %v6099_v8 = vcombine.low %v6076_v52, %v6077_v22  ;;  %v6249_v22 = vrot.slane %v8608_v58, %v6248_v17  ;;  %v6486_v17 = vld [vmem:[%s8680_s6 + $0x18] sm:$0xff] (!%p6803_p5) }
 0xb6d   : > { %v6113_v11 = vrot.slane %v6099_v8, %v7695_v20  ;;  %v6080_v31 = vld [vmem:[#allocation3 + $0xc] sm:$0x3] }
 0xb6e   : > { %v6079_v24 = vld [vmem:[#allocation3 + $0xa] sm:$0x3] }
 0xb6f   : > { %v6114_v28 = vcombine.low %v6106_v15, %v6113_v11  ;;  %v6115_v32 = vcombine.low %v6078_v50, %v6079_v24 }
 0xb71   : > { %7314 = vmatprep.mubr.msk.f32.mxu0 %vm388_vm1, %v6114_v28  ;;  %v6123_v44 = vrot.slane %v6115_v32, %v7695_v20  ;;  %v6349_v32 = vld [vmem:[%s7668_s21 + $0x30] sm:$0xff] }
 0xb72   : > { %v6081_v42 = vld [vmem:[#allocation3 + $0xe] sm:$0x3] }
 0xb73   : > { %v6116_v36 = vcombine.low %v6080_v31, %v6081_v42  ;;  %v6350_v31 = vld [vmem:[%s7668_s21 + $0x38] sm:$0xff] }
 0xb74   : > { %v7394_v42 = vpack.c.bf16 %v6350_v31, %v6349_v32 }
 0xb75   : > { %v6130_v33 = vrot.slane %v6116_v36, %v7695_v20  ;;  %v6258_v36 = vsub.s32 1, %v7686_v12 }
 0xb77   : > { %v6131_v19 = vcombine.low %v6123_v44, %v6130_v33  ;;  %v6259_v44 = vrot.slane %v8608_v58, %v6258_v36 }
 0xb79   : > { %7315 = vmatmul.mubr.msk.f32.vlgmr.msra.gmra.mrb[62].mxu0 %vm388_vm1, %v6131_v19 }
 0xb7a   : > { %7385 = vmatpush3.bf16.msra.mxu0 %v7382_v41  ;;  %v6473_v41 = vsub.s32 7, %v7686_v12 }
 0xb7b   : > { %7387 = vmatprep.subr.bf16.mxu0 %v7386_v13 }
 0xb7c   : > { %v6474_v57 = vrot.slane %v8608_v58, %v6473_v41 }
 0xb7e   : > { %7389 = vmatpush3.bf16.msra.mxu0 %v7386_v13 }
 0xb7f   : > { %7391 = vmatprep.subr.bf16.mxu0 %v7390_v23 }
 0xb82   : > { %7393 = vmatpush3.bf16.msra.mxu0 %v7390_v23 }
 0xb83   : > { %7395 = vmatprep.subr.bf16.mxu0 %v7394_v42 }
 0xb86   : > { %7397 = vmatpush3.bf16.msra.mxu0 %v7394_v42 }
 0xc4c   : > { %v7316_v37 = vpop.f32.mrb[62].mxu0 }
 0xc4d   : > { %v6208_v49 = vadd.f32 %v7316_v37, %v6089_v63  ;;  %v6202_v51 = vpop.f32.mrb[63].mxu0 }
 0xc4e   : > { %v6203_v10 = vadd.f32 %v6202_v51, %v6089_v63  ;;  %v6353_v51 = vsub.s32 3, %v7686_v12  ;;  %v6483_v12 = vld [vmem:[%s8680_s6] sm:$0xff] (!%p6803_p5) }
 0xc4f   : > { %v6212_v56 = vadd.f32 %v7568_v46, %v6208_v49 }
 0xc50   : > { %v6211_v54 = vadd.f32 %v7569_v60, %v6203_v10  ;;  %v6354_v10 = vrot.slane %v8608_v58, %v6353_v51  ;;  %v6484_v58 = vld [vmem:[%s8680_s6 + $0x8] sm:$0xff] (!%p6803_p5) }
 0xc51   : > { %v6216_v53 = vsel %vm388_vm1, %v6212_v56, 0.0  ;;  %v7398_v43 = vpack.c.bf16 (!%p6803_p5), %v6484_v58, %v6483_v12 }
 0xc52   : > { %6217 = vadd.xlane.f32.xlu1 %v6216_v53  ;;  %v6213_v20 = vsel %vm388_vm1, %v6211_v54, 0.0 }
 0xc53   : > { %6214 = vadd.xlane.f32.xlu0 %v6213_v20  ;;  %7399 = vmatprep.subr.bf16.mxu0 (!%p6803_p5), %v7398_v43 }
 0xcdf   : > { %v6218_v61 = vpop.xlane.xlu1 %6217 }
 0xce0   : > { %v6221_v34 = vmul.f32 0.03125, %v6218_v61  ;;  %v6215_v30 = vpop.xlane.xlu0 %6214 }
 0xce1   : > { %v6220_v2 = vmul.f32 0.03125, %v6215_v30 }
 0xce2   : > { %v6223_v35 = vsub.f32 %v6212_v56, %v6221_v34 }
 0xce3   : > { %v6222_v62 = vsub.f32 %v6211_v54, %v6220_v2 }
 0xce4   : > { %v6225_v5 = vmul.f32 %v6223_v35, %v6223_v35 }
 0xce5   : > { %v6224_v3 = vmul.f32 %v6222_v62, %v6222_v62 }
 0xce6   : > { %v6229_v6 = vsel %vm388_vm1, %v6225_v5, 0.0 }
 0xce7   : > { %v6226_v4 = vsel %vm388_vm1, %v6224_v3, 0.0 }
 0xce8   : > { %6227 = vadd.xlane.f32.xlu0 %v6226_v4 }
 0xcec   : > { %6230 = vadd.xlane.f32.xlu0 %v6229_v6 }
 0xd75   : > { %v6228_v21 = vpop.xlane.xlu0 %6227 }
 0xd76   : > { %v6232_v26 = vmul.f32 0.03125, %v6228_v21 }
 0xd78   : > { %v6234_v27 = vadd.f32 1e-05, %v6232_v26 }
 0xd79   : > { %v6231_v29 = vpop.xlane.xlu0 %6230 }
 0xd7a   : > { %7559 = vrsqrt.f32 %v6234_v27  ;;  %v6233_v55 = vmul.f32 0.03125, %v6231_v29 }
 0xd7c   : > { %v6235_v38 = vadd.f32 1e-05, %v6233_v55 }
 0xd7e   : > { %7561 = vrsqrt.f32 %v6235_v38  ;;  %v6485_v38 = vld [vmem:[%s8680_s6 + $0x10] sm:$0xff] (!%p6803_p5) }
 0xd84   : > { %v7560_v48 = vpop.eup %7559 }
 0xd85   : > { %v6238_v52 = vmul.f32 %v7560_v48, %v6222_v62  ;;  %v6804_v48 = vld [vmem:[%s8681_s7] ss:$0 sm:$0xff] (!%p6803_p5) }
 0xd87   : > { %v6244_v8 = vmul.f32 %v6243_v18, %v6238_v52 }
 0xd88   : > { %v7562_v15 = vpop.eup %7561 }
 0xd89   : > { %v6239_v11 = vmul.f32 %v7562_v15, %v6223_v35  ;;  %v6250_v24 = vadd.f32 %v6249_v22, %v6244_v8 }
 0xd8b   : > { %v6245_v28 = vmul.f32 %v6243_v18, %v6239_v11  ;;  %7325 = vmatprep.mubr.msk.f32.mxu1 %vm388_vm1, %v6250_v24  ;;  %v7402_v18 = vpack.c.bf16 (!%p6803_p5), %v6486_v17, %v6485_v38 }
 0xd8d   : > { %v6251_v50 = vadd.f32 %v6249_v22, %v6245_v28 }
 0xd8f   : > { %7326 = vmatmul.mubr.msk.f32.vlgmr.msra.gmra.mrb[68].mxu1 %vm388_vm1, %v6251_v50 }
 0xe62   : > { %v7327_v33 = vpop.f32.mrb[68].mxu1 }
 0xe63   : > { %v6338_v19 = vadd.f32 %v7327_v33, %v6259_v44  ;;  %v6332_v39 = vpop.f32.mrb[69].mxu1 }
 0xe64   : > { %v6333_v63 = vadd.f32 %v6332_v39, %v6259_v44 }
 0xe65   : > { %v6342_v49 = vmax.f32 %v6338_v19, 0.0 }
 0xe66   : > { %v6341_v37 = vmax.f32 %v6333_v63, 0.0 }
 0xe68   : > { %7344 = vmatprep.mubr.msk.f32.mxu0 %vm6355_vm11, %v6341_v37 }
 0xe69   : > { %7345 = vmatmul.mubr.msk.f32.vlgmr.msra.gmra.mrb[64].mxu0 %vm6355_vm11, %v6342_v49 }
 0xe6a   : > { %7401 = vmatpush3.bf16.msra.mxu0 (!%p6803_p5), %v7398_v43 }
 0xe6b   : > { %7403 = vmatprep.subr.bf16.mxu0 (!%p6803_p5), %v7402_v18 }
 0xe6e   : > { %7405 = vmatpush3.bf16.msra.mxu0 (!%p6803_p5), %v7402_v18 }
 0xf3c   : > { %v7346_v46 = vpop.f32.mrb[64].mxu0 }
 0xf3d   : > { %v6434_v56 = vadd.f32 %v7346_v46, %v6354_v10  ;;  %v6428_v60 = vpop.f32.mrb[65].mxu0 }
 0xf3e   : > { %v6429_v54 = vadd.f32 %v6428_v60, %v6354_v10 }
 0xf3f   : > { %v6438_v53 = vadd.f32 %v6434_v56, %v6251_v50 }
 0xf40   : > { %v6437_v20 = vadd.f32 %v6429_v54, %v6250_v24 }
 0xf41   : > { %v6442_v61 = vsel %vm388_vm1, %v6438_v53, 0.0 }
 0xf42   : > { %6443 = vadd.xlane.f32.xlu0 %v6442_v61  ;;  %v6439_v34 = vsel %vm388_vm1, %v6437_v20, 0.0 }
 0xf43   : > { %6440 = vadd.xlane.f32.xlu1 %v6439_v34 }
 0xfcf   : > { %v6444_v30 = vpop.xlane.xlu0 %6443 }
 0xfd0   : > { %v6446_v2 = vmul.f32 0.03125, %v6444_v30  ;;  %v6441_v35 = vpop.xlane.xlu1 %6440 }
 0xfd1   : > { %v6445_v62 = vmul.f32 0.03125, %v6441_v35 }
 0xfd2   : > { %v6448_v3 = vsub.f32 %v6438_v53, %v6446_v2 }
 0xfd3   : > { %v6447_v4 = vsub.f32 %v6437_v20, %v6445_v62 }
 0xfd4   : > { %v6450_v5 = vmul.f32 %v6448_v3, %v6448_v3 }
 0xfd5   : > { %v6449_v6 = vmul.f32 %v6447_v4, %v6447_v4 }
 0xfd6   : > { %v6454_v0 = vsel %vm388_vm1, %v6450_v5, 0.0 }
 0xfd7   : > { %6455 = vadd.xlane.f32.xlu0 %v6454_v0  ;;  %v6451_v45 = vsel %vm388_vm1, %v6449_v6, 0.0 }
 0xfd8   : > { %6452 = vadd.xlane.f32.xlu1 %v6451_v45 }
0x1064   : > { %v6456_v47 = vpop.xlane.xlu0 %6455 }
0x1065   : > { %v6458_v1 = vmul.f32 0.03125, %v6456_v47  ;;  %v6453_v59 = vpop.xlane.xlu1 %6452 }
0x1066   : > { %v6457_v7 = vmul.f32 0.03125, %v6453_v59 }
0x1067   : > { %v6460_v16 = vadd.f32 1e-05, %v6458_v1 }
0x1068   : > { %v6459_v25 = vadd.f32 1e-05, %v6457_v7 }
0x1069   : > { %7563 = vrsqrt.f32 %v6460_v16 }
0x106a   : > { %7565 = vrsqrt.f32 %v6459_v25 }
0x1073   : > { %v7564_v13 = vpop.eup %7563 }
0x1074   : > { %v7566_v14 = vpop.eup %7565  ;;  %v6464_v23 = vmul.f32 %v7564_v13, %v6448_v3 }
0x1075   : > { %v6463_v21 = vmul.f32 %v7566_v14, %v6447_v4  ;;  %6482 = sbr.rel (%p6803_p5) target bundleno = 4436 (0x1154), region = 60 }
0x1076   : > { %v6470_v26 = vmul.f32 %v6468_v9, %v6464_v23 }
0x1077   : > { %v6469_v27 = vmul.f32 %v6468_v9, %v6463_v21 }
0x1078   : > { %v6476_v29 = vadd.f32 %v6474_v57, %v6470_v26 }
0x1079   : > { %v6475_v55 = vadd.f32 %v6474_v57, %v6469_v27 }
0x107a   : > { %6478 = vst.msk [vmem:[#allocation2 + $0x8] sm:$0xff] %vm388_vm1, %v6476_v29 }
0x107b   : > { %6477 = vst.msk [vmem:[#allocation2] sm:$0xff] %vm388_vm1, %v6475_v55  ;;  %7355 = vmatprep.mubr.msk.f32.mxu0 (!%p6803_p5), %vm388_vm1, %v6475_v55 }
0x107c   : > { %7356 = vmatmul.mubr.msk.f32.vlgmr.msra.gmra.mrb[0].mxu0 %vm388_vm1, %v6476_v29 }
0x114f   : > { %v7357_v52 = vpop.f32.mrb[0].mxu0 }
0x1150   : > { %v6572_v22 = vadd.f32 %v7357_v52, %v6804_v48  ;;  %v6566_v8 = vpop.f32.mrb[1].mxu0 }
0x1151   : > { %v6567_v15 = vadd.f32 %v6804_v48, %v6566_v8 }
0x1152   : > { %6576 = vst [vmem:[%s8682_s8 + $0x8] sm:$0xff] %v6572_v22 }
0x1153   : > { %6575 = vst [vmem:[%s8682_s8] sm:$0xff] %v6567_v15 }
0x1154 PF: > { %s18_s27 = sadd.s32 1, %s7576_s27  }
0x1155   : > { %p15_p6 = scmp.ge.s32.totalorder %s18_s27, 4  }
0x1157   :  { %17 = sbr.rel (!%p15_p6) target bundleno = 1 (0x1), region = 98 }

</bundles_post_ra>
